<compile_context>
chip_gen: v5e
topology: v5e:2x2
jax: 0.10.0
libtpu: 0.0.40
codegen_flags: <defaults>
</compile_context>

<pallas_src>
import math

import jax
import jax.numpy as jnp
from jax.experimental import pallas as pl
from jax.experimental.pallas import tpu as pltpu

_INV_SQRT2 = 1.0 / math.sqrt(2.0)


# --------------------------------------------------------------------------
# Fused kernel: per-cycle-tile attention + softmax + mean-pool + folded MLP.
# Layout note: every intermediate keeps entries (L) on the sublane axis and
# features (D) on the lane axis, so the softmax reductions are sublane reduces
# with no lane<->sublane relayouts.
# --------------------------------------------------------------------------
def _cycle_agg_kernel(xg_ref, mask_ref, wa_ref, wf_ref, bias_ref, o_ref):
    xg = xg_ref[...]                                      # [TC, L, D] f32
    m = mask_ref[...]                                     # [TC, L, 1] f32 (1 = real entry)
    w_a = wa_ref[...]                                     # [1, D]

    # Per-entry attention logit (x @ W_atten^T) + leaky_relu(0.01).
    logit = jnp.sum(xg * w_a[None, :, :], axis=-1, keepdims=True)       # [TC, L, 1]
    logit = jnp.where(logit >= 0.0, logit, 0.01 * logit)

    # Masked segment softmax over each cycle's entries (torch_geometric semantics,
    # +1e-16 denominator).  Padded entries contribute nothing; empty cycles -> 0.
    masked = jnp.where(m > 0.0, logit, jnp.float32(-1e30))
    row_max = jnp.max(masked, axis=1, keepdims=True)                    # [TC, 1, 1]
    e = jnp.exp(masked - row_max) * m                                   # [TC, L, 1]
    denom = jnp.sum(e, axis=1, keepdims=True) + 1e-16                   # [TC, 1, 1]
    atten = e / denom                                                   # [TC, L, 1]

    # Weighted scatter-mean over entries.
    count = jnp.sum(m, axis=1, keepdims=True)                           # [TC, 1, 1]
    pooled = (jnp.sum(atten * xg, axis=1, keepdims=True)
              / jnp.maximum(count, 1.0))                                # [TC, 1, D]
    pooled = pooled[:, 0, :]                                            # [TC, D]

    # Folded (cycle_lin @ cycle_lin2 + inference BN) matmul + bias + exact GELU.
    h = jnp.dot(pooled, wf_ref[...], preferred_element_type=jnp.float32)  # [TC, out]
    h = h + bias_ref[...]
    h = 0.5 * h * (1.0 + jax.lax.erf(h * _INV_SQRT2))
    # TODO(synk): F.dropout is stochastic only in training mode; inference => identity.
    o_ref[...] = h.astype(o_ref.dtype)


def _fused_cycle_agg(xg, mask3, w_atten, w_fold, bias, *, vmem_budget_bytes=4 << 20):
    """pallas_call wrapper: grid over cycle tiles, no pads/slices/casts."""
    num_cycles, max_len, in_dim = xg.shape
    out_dim = w_fold.shape[1]

    # Cycle-tile size: dominant VMEM tenant is the xg tile (f32, double-buffered).
    # The budget keeps it well within the scoped VMEM limit on every generation
    # (including v7x's 64 MiB physical VMEM).
    per_cycle_bytes = max_len * in_dim * 4
    tc = vmem_budget_bytes // max(per_cycle_bytes, 1)
    tc = max(8, min(tc, 1024))
    tc = (tc // 8) * 8                       # keep (8,128)-legal when grid > 1
    if tc >= num_cycles:
        tc = num_cycles                      # single full block (legal even if < 8)
    grid = (pl.cdiv(num_cycles, tc),)        # partial edge tile: stores are masked

    return pl.pallas_call(
        _cycle_agg_kernel,
        out_shape=jax.ShapeDtypeStruct((num_cycles, out_dim), jnp.float32),
        grid=grid,
        in_specs=[
            pl.BlockSpec((tc, max_len, in_dim), lambda i: (i, 0, 0)),   # gathered x
            pl.BlockSpec((tc, max_len, 1), lambda i: (i, 0, 0)),        # entry mask
            pl.BlockSpec((1, in_dim), lambda i: (0, 0)),                # W_atten
            pl.BlockSpec((in_dim, out_dim), lambda i: (0, 0)),          # folded W
            pl.BlockSpec((1, out_dim), lambda i: (0, 0)),               # folded bias
        ],
        out_specs=pl.BlockSpec((tc, out_dim), lambda i: (i, 0)),
        compiler_params=pltpu.CompilerParams(
            dimension_semantics=("parallel",)),
    )(xg, mask3, w_atten, w_fold, bias)


# --------------------------------------------------------------------------
# One-time parameter preparation (out of the per-forward hot path, all f32).
# --------------------------------------------------------------------------
def prepare_params(params, eps=1e-5):
    """Fold cycle_lin/cycle_lin2 and inference-BN into one matrix + bias."""
    w12 = params["cycle_lin"].T @ params["cycle_lin2"].T                 # [in, out]
    scale = params["bn_gamma"] * jax.lax.rsqrt(params["bn_running_var"] + eps)
    w_fold = (w12 * scale[None, :]).astype(jnp.float32)                 # [in, out]
    bias = (params["bn_beta"] - params["bn_running_mean"] * scale
            ).astype(jnp.float32).reshape(1, -1)                        # [1, out]
    w_atten = params["cycle_atten"].astype(jnp.float32)                 # [1, in]
    return {"w_fold": w_fold, "bias": bias, "w_atten": w_atten}


# --------------------------------------------------------------------------
# Ragged -> dense padded tables (cheap int32 glue; topology-dependent).
# --------------------------------------------------------------------------
def build_cycle_tables(cycle_id, vert_id, num_cycles, max_len):
    n_entries = cycle_id.shape[0]
    order = jnp.argsort(cycle_id)
    sc = cycle_id[order]
    sv = vert_id[order]
    counts = jax.ops.segment_sum(jnp.ones((n_entries,), jnp.int32), cycle_id,
                                 num_segments=num_cycles)
    starts = jnp.cumsum(counts) - counts                        # exclusive prefix sum
    pos = jnp.arange(n_entries, dtype=jnp.int32) - starts[sc]   # slot within its cycle
    vert_tbl = jnp.zeros((num_cycles, max_len), jnp.int32).at[sc, pos].set(sv)
    mask = jnp.zeros((num_cycles, max_len), jnp.float32).at[sc, pos].set(1.0)
    return vert_tbl, mask


# --------------------------------------------------------------------------
# Full forward.  cycle_id = cycle_info[2] (target cycle per entry),
# vert_id = cycle_info[3] (source vertex per entry).
# --------------------------------------------------------------------------
def cycle_agg_forward(x, cycle_id, vert_id, num_cycles, max_len, prepped):
    vert_tbl, mask = build_cycle_tables(cycle_id, vert_id, num_cycles, max_len)
    # Single data-dependent row gather stays in XLA (one HBM pass); everything
    # downstream is one fused Pallas kernel.
    xg = x[vert_tbl]                                   # [num_cycles, max_len, in_dim]
    return _fused_cycle_agg(xg, mask[:, :, None], prepped["w_atten"],
                            prepped["w_fold"], prepped["bias"])


# --------------------------------------------------------------------------
# Reference (pure JAX, unfused f32) and demo
# --------------------------------------------------------------------------
def _reference(x, cycle_id, vert_id, num_cycles, params, eps=1e-5):
    logits = x[vert_id] @ params["cycle_atten"].T
    logits = jnp.where(logits >= 0, logits, 0.01 * logits)
    seg_max = jax.ops.segment_max(logits, cycle_id, num_segments=num_cycles)
    e = jnp.exp(logits - seg_max[cycle_id])
    s = jax.ops.segment_sum(e, cycle_id, num_segments=num_cycles) + 1e-16
    atten = e / s[cycle_id]
    xw = atten * x[vert_id]
    pooled = jax.ops.segment_sum(xw, cycle_id, num_segments=num_cycles)
    cnt = jax.ops.segment_sum(jnp.ones((cycle_id.shape[0],), jnp.float32),
                              cycle_id, num_segments=num_cycles)
    pooled = pooled / jnp.maximum(cnt, 1.0)[:, None]
    h = pooled @ params["cycle_lin"].T @ params["cycle_lin2"].T
    scale = params["bn_gamma"] * jax.lax.rsqrt(params["bn_running_var"] + eps)
    h = (h - params["bn_running_mean"]) * scale + params["bn_beta"]
    return 0.5 * h * (1.0 + jax.lax.erf(h * _INV_SQRT2))


def _kaiming_uniform(key, out_dim, in_dim):
    # nn.init.kaiming_uniform_(a=0, mode='fan_in', nonlinearity='relu')
    bound = math.sqrt(6.0 / in_dim)
    return jax.random.uniform(key, (out_dim, in_dim), jnp.float32, -bound, bound)


if __name__ == "__main__":
    key = jax.random.PRNGKey(0)
    ks = jax.random.split(key, 6)

    # small synthetic graph / cycle sizes
    n_vertices, input_dim, output_dim = 48, 16, 32
    n_cycles, n_entries = 12, 40

    x = jax.random.normal(ks[0], (n_vertices, input_dim), jnp.float32)
    cycle_id = jax.random.randint(ks[1], (n_entries,), 0, n_cycles)     # cycle_info[2]
    vert_id = jax.random.randint(ks[2], (n_entries,), 0, n_vertices)    # cycle_info[3]

    params = {
        "cycle_atten": _kaiming_uniform(ks[3], 1, input_dim),
        "cycle_lin": _kaiming_uniform(ks[4], output_dim, input_dim),
        "cycle_lin2": _kaiming_uniform(ks[5], output_dim, output_dim),
        "bn_gamma": jnp.ones((output_dim,), jnp.float32),
        "bn_beta": jnp.zeros((output_dim,), jnp.float32),
        "bn_running_mean": jnp.zeros((output_dim,), jnp.float32),
        "bn_running_var": jnp.ones((output_dim,), jnp.float32),
    }

    # one-time weight/BN fold, hoisted out of the per-forward hot path
    prepped = prepare_params(params)

    # static padded cycle length (topology-dependent; computed once per graph)
    max_len = int(jnp.max(jnp.bincount(cycle_id, length=n_cycles)))

    fwd = jax.jit(cycle_agg_forward, static_argnames=("num_cycles", "max_len"))
    out = fwd(x, cycle_id, vert_id, n_cycles, max_len, prepped)
    jax.block_until_ready(out)

    assert out.shape == (n_cycles, output_dim) and out.dtype == jnp.float32
    ref = _reference(x, cycle_id, vert_id, n_cycles, params)
    max_err = float(jnp.max(jnp.abs(out - ref)))
    # f32 end-to-end; remaining delta vs the unfused reference is only MXU
    # default-precision matmul + weight-folding rounding.
    assert max_err < 5e-2, f"max abs error vs reference too large: {max_err}"
    print("KERNEL_OK")
</pallas_src>

<mosaic_0001>
module attributes {stable_mosaic.version = 11 : i64} {
  func.func @_cycle_agg_kernel(%arg0: i32, %arg1: memref<12x6x16xf32, #tpu.memory_space<vmem>>, %arg2: memref<12x6x1xf32, #tpu.memory_space<vmem>>, %arg3: memref<1x16xf32, #tpu.memory_space<vmem>>, %arg4: memref<16x32xf32, #tpu.memory_space<vmem>>, %arg5: memref<1x32xf32, #tpu.memory_space<vmem>>, %arg6: memref<12x32xf32, #tpu.memory_space<vmem>>) attributes {dimension_semantics = [#tpu.dimension_semantics<parallel>], iteration_bounds = array<i64: 1>, scalar_prefetch = 0 : i64, scratch_operands = 0 : i64, tpu.core_type = #tpu.core_type<tc>, window_params = [{transform_indices = @transform_0, window_bounds = array<i64: 12, 6, 16>}, {transform_indices = @transform_1, window_bounds = array<i64: 12, 6, 1>}, {pipeline_mode = #tpu.pipeline_mode<synchronous>, transform_indices = @transform_2, window_bounds = array<i64: 1, 16>}, {pipeline_mode = #tpu.pipeline_mode<synchronous>, transform_indices = @transform_3, window_bounds = array<i64: 16, 32>}, {pipeline_mode = #tpu.pipeline_mode<synchronous>, transform_indices = @transform_4, window_bounds = array<i64: 1, 32>}, {transform_indices = @transform_5, window_bounds = array<i64: 12, 32>}]} {
    %c0 = arith.constant 0 : index
    %c0_0 = arith.constant 0 : index
    %c0_1 = arith.constant 0 : index
    %0 = vector.load %arg1[%c0, %c0_0, %c0_1] : memref<12x6x16xf32, #tpu.memory_space<vmem>>, vector<12x6x16xf32>
    %c0_2 = arith.constant 0 : index
    %c0_3 = arith.constant 0 : index
    %c0_4 = arith.constant 0 : index
    %1 = vector.load %arg2[%c0_2, %c0_3, %c0_4] : memref<12x6x1xf32, #tpu.memory_space<vmem>>, vector<12x6x1xf32>
    %c0_5 = arith.constant 0 : index
    %c0_6 = arith.constant 0 : index
    %2 = vector.load %arg3[%c0_5, %c0_6] : memref<1x16xf32, #tpu.memory_space<vmem>>, vector<1x16xf32>
    %3 = vector.shape_cast %2 : vector<1x16xf32> to vector<1x1x16xf32>
    %4 = vector.broadcast %3 : vector<1x1x16xf32> to vector<12x6x16xf32>
    %5 = arith.mulf %0, %4 : vector<12x6x16xf32>
    %cst = arith.constant dense<0.000000e+00> : vector<12x6xf32>
    %6 = vector.multi_reduction <add>, %5, %cst [2] : vector<12x6x16xf32> to vector<12x6xf32>
    %7 = vector.shape_cast %6 : vector<12x6xf32> to vector<12x6x1xf32>
    %cst_7 = arith.constant 0.000000e+00 : f32
    %8 = vector.broadcast %cst_7 : f32 to vector<12x6x1xf32>
    %9 = arith.cmpf oge, %7, %8 : vector<12x6x1xf32>
    %cst_8 = arith.constant 0.00999999977 : f32
    %10 = vector.broadcast %cst_8 : f32 to vector<12x6x1xf32>
    %11 = arith.mulf %10, %7 : vector<12x6x1xf32>
    %12 = arith.select %9, %7, %11 : vector<12x6x1xi1>, vector<12x6x1xf32>
    %cst_9 = arith.constant 0.000000e+00 : f32
    %13 = vector.broadcast %cst_9 : f32 to vector<12x6x1xf32>
    %14 = arith.cmpf ogt, %1, %13 : vector<12x6x1xf32>
    %cst_10 = arith.constant -1.000000e+30 : f32
    %15 = vector.broadcast %cst_10 : f32 to vector<12x6x1xf32>
    %16 = arith.select %14, %12, %15 : vector<12x6x1xi1>, vector<12x6x1xf32>
    %cst_11 = arith.constant dense<0xFF800000> : vector<12x1xf32>
    %17 = vector.multi_reduction <maximumf>, %16, %cst_11 [1] : vector<12x6x1xf32> to vector<12x1xf32>
    %18 = vector.shape_cast %17 : vector<12x1xf32> to vector<12x1x1xf32>
    %19 = vector.broadcast %18 : vector<12x1x1xf32> to vector<12x6x1xf32>
    %20 = arith.subf %16, %19 : vector<12x6x1xf32>
    %21 = math.exp %20 : vector<12x6x1xf32>
    %22 = arith.mulf %21, %1 : vector<12x6x1xf32>
    %cst_12 = arith.constant dense<0.000000e+00> : vector<12x1xf32>
    %23 = vector.multi_reduction <add>, %22, %cst_12 [1] : vector<12x6x1xf32> to vector<12x1xf32>
    %24 = vector.shape_cast %23 : vector<12x1xf32> to vector<12x1x1xf32>
    %cst_13 = arith.constant 1.000000e-16 : f32
    %25 = vector.broadcast %cst_13 : f32 to vector<12x1x1xf32>
    %26 = arith.addf %24, %25 : vector<12x1x1xf32>
    %27 = vector.broadcast %26 : vector<12x1x1xf32> to vector<12x6x1xf32>
    %28 = arith.divf %22, %27 : vector<12x6x1xf32>
    %cst_14 = arith.constant dense<0.000000e+00> : vector<12x1xf32>
    %29 = vector.multi_reduction <add>, %1, %cst_14 [1] : vector<12x6x1xf32> to vector<12x1xf32>
    %30 = vector.shape_cast %29 : vector<12x1xf32> to vector<12x1x1xf32>
    %31 = vector.broadcast %28 : vector<12x6x1xf32> to vector<12x6x16xf32>
    %32 = arith.mulf %31, %0 : vector<12x6x16xf32>
    %cst_15 = arith.constant dense<0.000000e+00> : vector<12x16xf32>
    %33 = vector.multi_reduction <add>, %32, %cst_15 [1] : vector<12x6x16xf32> to vector<12x16xf32>
    %34 = vector.shape_cast %33 : vector<12x16xf32> to vector<12x1x16xf32>
    %cst_16 = arith.constant 1.000000e+00 : f32
    %35 = vector.broadcast %cst_16 : f32 to vector<12x1x1xf32>
    %36 = arith.maximumf %30, %35 : vector<12x1x1xf32>
    %37 = vector.broadcast %36 : vector<12x1x1xf32> to vector<12x1x16xf32>
    %38 = arith.divf %34, %37 : vector<12x1x16xf32>
    %39 = vector.shape_cast %38 : vector<12x1x16xf32> to vector<12x16xf32>
    %c0_17 = arith.constant 0 : index
    %c0_18 = arith.constant 0 : index
    %40 = vector.load %arg4[%c0_17, %c0_18] : memref<16x32xf32, #tpu.memory_space<vmem>>, vector<16x32xf32>
    %cst_19 = arith.constant dense<0.000000e+00> : vector<12x32xf32>
    %41 = tpu.matmul %39, %40, %cst_19 {dimension_numbers = #tpu.dot_dimension_numbers<[1], [0], [0], [1], [0, 0, 1, 1], [], []>} : vector<12x16xf32>, vector<16x32xf32>, vector<12x32xf32> -> vector<12x32xf32>
    %c0_20 = arith.constant 0 : index
    %c0_21 = arith.constant 0 : index
    %42 = vector.load %arg5[%c0_20, %c0_21] : memref<1x32xf32, #tpu.memory_space<vmem>>, vector<1x32xf32>
    %43 = vector.broadcast %42 : vector<1x32xf32> to vector<12x32xf32>
    %44 = arith.addf %41, %43 : vector<12x32xf32>
    %cst_22 = arith.constant 5.000000e-01 : f32
    %45 = vector.broadcast %cst_22 : f32 to vector<12x32xf32>
    %46 = arith.mulf %45, %44 : vector<12x32xf32>
    %cst_23 = arith.constant 0.707106769 : f32
    %47 = vector.broadcast %cst_23 : f32 to vector<12x32xf32>
    %48 = arith.mulf %44, %47 : vector<12x32xf32>
    %49 = math.erf %48 : vector<12x32xf32>
    %cst_24 = arith.constant 1.000000e+00 : f32
    %50 = vector.broadcast %cst_24 : f32 to vector<12x32xf32>
    %51 = arith.addf %50, %49 : vector<12x32xf32>
    %52 = arith.mulf %46, %51 : vector<12x32xf32>
    %c0_25 = arith.constant 0 : index
    %c0_26 = arith.constant 0 : index
    %53 = vector.load %arg6[%c0_25, %c0_26] : memref<12x32xf32, #tpu.memory_space<vmem>>, vector<12x32xf32>
    tpu.vector_store %arg6[%c0_25, %c0_26], %52 {strides = array<i32>} : memref<12x32xf32, #tpu.memory_space<vmem>>, vector<12x32xf32>,
    return
  }
  func.func @transform_0(%arg0: i32) -> (i32, i32, i32) {
    %c0_i32 = arith.constant 0 : i32
    %c0_i32_0 = arith.constant 0 : i32
    %c0_i32_1 = arith.constant 0 : i32
    return %arg0, %c0_i32, %c0_i32_0 : i32, i32, i32
  }
  func.func @transform_1(%arg0: i32) -> (i32, i32, i32) {
    %c0_i32 = arith.constant 0 : i32
    %c0_i32_0 = arith.constant 0 : i32
    %c0_i32_1 = arith.constant 0 : i32
    return %arg0, %c0_i32, %c0_i32_0 : i32, i32, i32
  }
  func.func @transform_2(%arg0: i32) -> (i32, i32) {
    %c0_i32 = arith.constant 0 : i32
    %c0_i32_0 = arith.constant 0 : i32
    %c0_i32_1 = arith.constant 0 : i32
    return %c0_i32, %c0_i32_0 : i32, i32
  }
  func.func @transform_3(%arg0: i32) -> (i32, i32) {
    %c0_i32 = arith.constant 0 : i32
    %c0_i32_0 = arith.constant 0 : i32
    %c0_i32_1 = arith.constant 0 : i32
    return %c0_i32, %c0_i32_0 : i32, i32
  }
  func.func @transform_4(%arg0: i32) -> (i32, i32) {
    %c0_i32 = arith.constant 0 : i32
    %c0_i32_0 = arith.constant 0 : i32
    %c0_i32_1 = arith.constant 0 : i32
    return %c0_i32, %c0_i32_0 : i32, i32
  }
  func.func @transform_5(%arg0: i32) -> (i32, i32) {
    %c0_i32 = arith.constant 0 : i32
    %c0_i32_0 = arith.constant 0 : i32
    return %arg0, %c0_i32 : i32, i32
  }
}

</mosaic_0001>

<bundles_post_ra>
// kernel: cycle_agg_forward.1
= control target key start
LH: loop header
LB: loop body
LE: loop exit
PB: predicated region body
PF: predicated region fallthrough
CT: control target
= control target key end

     0   :  { %vm61_vm0 = vcmask 128000   ;;  %s2389_s0 = inlined_call_operand.vmem [shape: f32[12,6,16], index: 0, kind: input, shape index: {}]   ;;  %s2390_s1 = inlined_call_operand.vmem [shape: f32[12,6,1], index: 1, kind: input, shape index: {}]   ;;  %s2391_s2 = inlined_call_operand.vmem [shape: f32[1,16], index: 2, kind: input, shape index: {}]   ;;  %s2392_s3 = inlined_call_operand.vmem [shape: f32[16,32], index: 3, kind: input, shape index: {}]   ;;  %s2393_s4 = inlined_call_operand.vmem [shape: f32[1,32], index: 4, kind: input, shape index: {}]   ;;  %s2394_s5 = inlined_call_operand.hbm [shape: f32[12,32], index: 5, kind: output, shape index: {}]  }
   0x1   :  { %v25_v0 = vld [vmem:[%s2389_s0 + $0x20] sm:$0x3f]  ;;  %v23_v2 = vld [vmem:[%s2389_s0 + $0x10] sm:$0x3f]  ;;  %v26_v7 = vld [vmem:[%s2389_s0 + $0x28] sm:$0x3f] }
   0x2   :  { %v1245_v1 = vld [vmem:[%s2391_s2] ss:$0 sm:$0xff]  ;;  %v24_v8 = vld [vmem:[%s2389_s0 + $0x18] sm:$0x3f]  ;;  %v22_v12 = vld [vmem:[%s2389_s0 + $0x8] sm:$0x3f] }
   0x3   :  { %v21_v3 = vld [vmem:[%s2389_s0] sm:$0x3f]  ;;  %v53_v4 = vmul.f32 %v1245_v1, %v25_v0  ;;  %v51_v5 = vmul.f32 %v1245_v1, %v23_v2  ;;  %v54_v13 = vmul.f32 %v1245_v1, %v26_v7  ;;  %v52_v14 = vmul.f32 %v1245_v1, %v24_v8 }
   0x4   :  { %v49_v6 = vmul.f32 %v1245_v1, %v21_v3  ;;  %v50_v15 = vmul.f32 %v1245_v1, %v22_v12 }
   0x5   :  { %v74_v9 = vsel %vm61_vm0, %v53_v4, 0.0  ;;  %v68_v10 = vsel %vm61_vm0, %v51_v5, 0.0 }
   0x6   :  { %v62_v11 = vsel %vm61_vm0, %v49_v6, 0.0  ;;  %75 = vadd.xlane.f32.xlu2 %v74_v9  ;;  %69 = vadd.xlane.f32.xlu1 %v68_v10 }
   0x7   :  { %63 = vadd.xlane.f32.xlu0 %v62_v11 }
   0x8   :  { %10 = vsyncpa [#allocation3], 0  ;;  %v77_v16 = vsel %vm61_vm0, %v54_v13, 0.0  ;;  %v71_v17 = vsel %vm61_vm0, %v52_v14, 0.0  ;;  %v65_v18 = vsel %vm61_vm0, %v50_v15, 0.0  ;;  %vm158_vm1 = vcmask 5120  }
   0x9   :  { %v27_v19 = vld [vmem:[%s2389_s0 + $0x30] sm:$0x3f]  ;;  %v30_v20 = vld [vmem:[%s2389_s0 + $0x48] sm:$0x3f]  ;;  %v29_v21 = vld [vmem:[%s2389_s0 + $0x40] sm:$0x3f] }
   0xa   :  { %v55_v22 = vmul.f32 %v1245_v1, %v27_v19  ;;  %v58_v23 = vmul.f32 %v1245_v1, %v30_v20  ;;  %v57_v24 = vmul.f32 %v1245_v1, %v29_v21  ;;  %v32_v28 = vld [vmem:[%s2389_s0 + $0x58] sm:$0x3f]  ;;  %v31_v30 = vld [vmem:[%s2389_s0 + $0x50] sm:$0x3f]  ;;  %v1449_v37 = vld [vmem:[%s2390_s1] sm:$0x3f] }
   0xb   :  { %v28_v29 = vld [vmem:[%s2389_s0 + $0x38] sm:$0x3f]  ;;  %v60_v31 = vmul.f32 %v1245_v1, %v32_v28  ;;  %v59_v33 = vmul.f32 %v1245_v1, %v31_v30  ;;  %v567_v38 = vsel %vm158_vm1, %v1449_v37, 0.0  ;;  %v1456_v45 = vld [vmem:[%s2390_s1 + $0x8] sm:$0x3f]  ;;  %v1361_v47 = vmov 0  }
   0xc   :  { %v80_v25 = vsel %vm61_vm0, %v55_v22, 0.0  ;;  %v89_v26 = vsel %vm61_vm0, %v58_v23, 0.0  ;;  %v86_v27 = vsel %vm61_vm0, %v57_v24, 0.0  ;;  %v56_v32 = vmul.f32 %v1245_v1, %v28_v29  ;;  %1242 = vset.pattern.permute.xlu0 %v1361_v47  ;;  %1243 = vset.pattern.permute.xlu1 %v1361_v47  ;;  %v1461_v48 = vld [vmem:[%s2390_s1 + $0x20] sm:$0x3f]  ;;  %s1220_s19 = sshll.u32 %s2394_s5, 4  ;;  %s1221_s19 = int_to_ptr.hbm [resolvable:$true] %s1220_s19 }
   0xd   :  { %v95_v34 = vsel %vm61_vm0, %v60_v31, 0.0  ;;  %v92_v36 = vsel %vm61_vm0, %v59_v33, 0.0  ;;  %v568_v39 = vrot.slane %v567_v38, 4  ;;  %v574_v49 = vsel %vm158_vm1, %v1456_v45, 0.0  ;;  %1244 = vset.pattern.permute.xlu2 %v1361_v47  ;;  %v1470_v56 = vld [vmem:[%s2390_s1 + $0x40] sm:$0x3f] }
   0xe   :  { %78 = vadd.xlane.f32.xlu2 %v77_v16  ;;  %72 = vadd.xlane.f32.xlu1 %v71_v17  ;;  %v83_v35 = vsel %vm61_vm0, %v56_v32, 0.0  ;;  %v575_v50 = vrot.slane %v574_v49, 4  ;;  %v595_v51 = vsel %vm158_vm1, %v1461_v48, 0.0  ;;  %v1475_v58 = vld [vmem:[%s2390_s1 + $0x28] sm:$0x3f]  ;;  %v623_v2 = vsel %vm158_vm1, %v1470_v56, 0.0 }
   0xf   :  { %66 = vadd.xlane.f32.xlu0 %v65_v18  ;;  %v569_v40 = vadd.f32 %v568_v39, %v567_v38  ;;  %v596_v52 = vrot.slane %v595_v51, 4  ;;  %v1480_v60 = vld [vmem:[%s2390_s1 + $0x10] sm:$0x3f]  ;;  %v602_v62 = vsel %vm158_vm1, %v1475_v58, 0.0  ;;  %v624_v5 = vrot.slane %v623_v2, 4  ;;  %s1363_s20 = smov 128  }
  0x10   :  { %v576_v53 = vadd.f32 %v575_v50, %v574_v49  ;;  %v603_v0 = vrot.slane %v602_v62, 4  ;;  %v581_v1 = vsel %vm158_vm1, %v1480_v60, 0.0  ;;  %vm138_vm2 = vcmp.gt.f32.partialorder %v1461_v48, 0.0  ;;  %v1502_v33 = vld [vmem:[%s2390_s1 + $0x18] sm:$0x3f]  ;;  %s1364_s21 = smov 8  }
  0x11   :  { %v570_v41 = vrot.slane %v569_v40, 2  ;;  %v597_v54 = vadd.f32 %v596_v52, %v595_v51  ;;  %v582_v4 = vrot.slane %v581_v1, 4  ;;  %v625_v10 = vadd.f32 %v624_v5, %v623_v2 }
  0x12   :  { %v577_v55 = vrot.slane %v576_v53, 2  ;;  %v604_v7 = vadd.f32 %v603_v0, %v602_v62  ;;  %vm136_vm3 = vcmp.gt.f32.partialorder %v1480_v60, 0.0  ;;  %vm134_vm4 = vcmp.gt.f32.partialorder %v1449_v37, 0.0 }
  0x13   :  { %v571_v42 = vadd.f32 %v570_v41, %v569_v40  ;;  %v598_v57 = vrot.slane %v597_v54, 2  ;;  %v583_v9 = vadd.f32 %v582_v4, %v581_v1  ;;  %v626_v15 = vrot.slane %v625_v10, 2 }
  0x14   :  { %v578_v59 = vadd.f32 %v577_v55, %v576_v53  ;;  %v605_v12 = vrot.slane %v604_v7, 2  ;;  %vm139_vm8 = vcmp.gt.f32.partialorder %v1475_v58, 0.0  ;;  %vm137_vm9 = vcmp.gt.f32.partialorder %v1502_v33, 0.0 }
  0x15   :  { %v572_v43 = vrot.slane %v571_v42, 1  ;;  %v599_v61 = vadd.f32 %v598_v57, %v597_v54  ;;  %v584_v14 = vrot.slane %v583_v9, 2  ;;  %v627_v20 = vadd.f32 %v626_v15, %v625_v10 }
  0x16   :  { %81 = vadd.xlane.f32.xlu2 %v80_v25  ;;  %90 = vadd.xlane.f32.xlu1 %v89_v26  ;;  %v579_v63 = vrot.slane %v578_v59, 1  ;;  %v606_v16 = vadd.f32 %v605_v12, %v604_v7  ;;  %vm135_vm10 = vcmp.gt.f32.partialorder %v1456_v45, 0.0 }
  0x17   :  { %87 = vadd.xlane.f32.xlu0 %v86_v27  ;;  %v573_v44 = vadd.f32 %v572_v43, %v571_v42  ;;  %v600_v3 = vrot.slane %v599_v61, 1  ;;  %v585_v19 = vadd.f32 %v584_v14, %v583_v9  ;;  %v628_v29 = vrot.slane %v627_v20, 1 }
  0x18   :  { %v580_v6 = vadd.f32 %v579_v63, %v578_v59  ;;  %v607_v25 = vrot.slane %v606_v16, 1 }
  0x19   :  { %v807_v46 = vmax.f32 %v573_v44, 1.0  ;;  %v601_v8 = vadd.f32 %v600_v3, %v599_v61  ;;  %v586_v26 = vrot.slane %v585_v19, 1  ;;  %v629_v52 = vadd.f32 %v628_v29, %v627_v20 }
  0x1a   :  { %v808_v11 = vmax.f32 %v580_v6, 1.0  ;;  %v1524_v6 = vld [vmem:[%s2390_s1 + $0x30] sm:$0x3f] }
  0x1b   :  { %v811_v13 = vmax.f32 %v601_v8, 1.0  ;;  %v587_v39 = vadd.f32 %v586_v26, %v585_v19  ;;  %v815_v1 = vmax.f32 %v629_v52, 1.0  ;;  %vm140_vm14 = vcmp.gt.f32.partialorder %v1524_v6, 0.0 }
  0x1d   :  { %v809_v51 = vmax.f32 %v587_v39, 1.0 }
  0x1e   :  { %96 = vadd.xlane.f32.xlu2 %v95_v34  ;;  %84 = vadd.xlane.f32.xlu1 %v83_v35  ;;  %v608_v34 = vadd.f32 %v607_v25, %v606_v16  ;;  %v1542_v16 = vld [vmem:[%s2390_s1 + $0x38] sm:$0x3f] }
  0x1f   :  { %93 = vadd.xlane.f32.xlu0 %v92_v36 }
  0x20   :  { %v812_v44 = vmax.f32 %v608_v34, 1.0 }
  0x33   :  { %821 = vperm.xlu0 %1242, %v807_v46  }
  0x36   :  { %831 = vperm.xlu2 %1244, %v809_v51  }
  0x37   :  { %826 = vperm.xlu1 %1243, %v808_v11   ;;  %v1535_v11 = vld [vmem:[%s2390_s1 + $0x48] sm:$0x3f] }
  0x3b   :  { %841 = vperm.xlu0 %1242, %v811_v13  }
  0x3f   :  { %846 = vperm.xlu1 %1243, %v812_v44  }
  0x43   :  { %861 = vperm.xlu0 %1242, %v815_v1  }
  0x79   :  { %v76_v17 = vpop.xlane.xlu2 %75  ;;  %v70_v18 = vpop.xlane.xlu1 %69 }
  0x7a   :  { %vm102_vm5 = vcmp.ge.f32.partialorder %v76_v17, 0.0  ;;  %v114_v21 = vmul.f32 0.01, %v76_v17  ;;  %vm100_vm6 = vcmp.ge.f32.partialorder %v70_v18, 0.0  ;;  %v112_v22 = vmul.f32 0.01, %v70_v18  ;;  %v64_v23 = vpop.xlane.xlu0 %63 }
  0x7b   :  { %vm98_vm7 = vcmp.ge.f32.partialorder %v64_v23, 0.0  ;;  %v110_v24 = vmul.f32 0.01, %v64_v23 }
  0x7c   :  { %v126_v27 = vsel %vm102_vm5, %v76_v17, %v114_v21  ;;  %v124_v28 = vsel %vm100_vm6, %v70_v18, %v112_v22  ;;  %vm141_vm6 = vcmp.gt.f32.partialorder %v1542_v16, 0.0 }
  0x7d   :  { %v1493_v30 = vsel %vm138_vm2, %v126_v27, -1e+30  ;;  %v1497_v31 = vsel %vm136_vm3, %v124_v28, -1e+30  ;;  %v122_v32 = vsel %vm98_vm7, %v64_v23, %v110_v24  ;;  %v616_v28 = vsel %vm158_vm1, %v1542_v16, 0.0 }
  0x7e   :  { %v187_v35 = vsel %vm158_vm1, %v1493_v30, -inf  ;;  %v173_v36 = vsel %vm158_vm1, %v1497_v31, -inf  ;;  %v1510_v38 = vsel %vm134_vm4, %v122_v32, -1e+30  ;;  %vm143_vm2 = vcmp.gt.f32.partialorder %v1535_v11, 0.0 }
  0x7f   :  { %v188_v40 = vrot.slane %v187_v35, 4  ;;  %v174_v41 = vrot.slane %v173_v36, 4  ;;  %v159_v42 = vsel %vm158_vm1, %v1510_v38, -inf  ;;  %vm142_vm3 = vcmp.gt.f32.partialorder %v1470_v56, 0.0 }
  0x80   :  { %v160_v43 = vrot.slane %v159_v42, 4 }
  0x81   :  { %v189_v46 = vmax.f32 %v187_v35, %v188_v40  ;;  %v175_v47 = vmax.f32 %v173_v36, %v174_v41  ;;  %v79_v49 = vpop.xlane.xlu2 %78  ;;  %v73_v50 = vpop.xlane.xlu1 %72  ;;  %v1557_v35 = vld [vmem:[%s2390_s1 + $0x58] sm:$0x3f] }
  0x82   :  { %v161_v53 = vmax.f32 %v159_v42, %v160_v43  ;;  %vm103_vm11 = vcmp.ge.f32.partialorder %v79_v49, 0.0  ;;  %v115_v54 = vmul.f32 0.01, %v79_v49  ;;  %vm101_vm12 = vcmp.ge.f32.partialorder %v73_v50, 0.0  ;;  %v67_v55 = vpop.xlane.xlu0 %66 }
  0x83   :  { %v190_v57 = vrot.slane %v189_v46, 2  ;;  %v176_v59 = vrot.slane %v175_v47, 2  ;;  %v113_v61 = vmul.f32 0.01, %v73_v50  ;;  %vm99_vm13 = vcmp.ge.f32.partialorder %v67_v55, 0.0 }
  0x84   :  { %v162_v62 = vrot.slane %v161_v53, 2  ;;  %v127_v63 = vsel %vm103_vm11, %v79_v49, %v115_v54  ;;  %v111_v0 = vmul.f32 0.01, %v67_v55  ;;  %vm145_vm5 = vcmp.gt.f32.partialorder %v1557_v35, 0.0 }
  0x85   :  { %v191_v2 = vmax.f32 %v189_v46, %v190_v57  ;;  %v177_v3 = vmax.f32 %v175_v47, %v176_v59  ;;  %v1519_v4 = vsel %vm139_vm8, %v127_v63, -1e+30  ;;  %v125_v5 = vsel %vm101_vm12, %v73_v50, %v113_v61 }
  0x86   :  { %v163_v7 = vmax.f32 %v161_v53, %v162_v62  ;;  %v194_v8 = vsel %vm158_vm1, %v1519_v4, -inf  ;;  %v1530_v9 = vsel %vm137_vm9, %v125_v5, -1e+30  ;;  %v123_v10 = vsel %vm99_vm13, %v67_v55, %v111_v0 }
  0x87   :  { %v192_v12 = vrot.slane %v191_v2, 1  ;;  %v178_v13 = vrot.slane %v177_v3, 1  ;;  %v195_v14 = vrot.slane %v194_v8, 4  ;;  %v180_v15 = vsel %vm158_vm1, %v1530_v9, -inf }
  0x88   :  { %v164_v17 = vrot.slane %v163_v7, 1  ;;  %v181_v18 = vrot.slane %v180_v15, 4  ;;  %v1546_v19 = vsel %vm135_vm10, %v123_v10, -1e+30  ;;  %v617_v46 = vrot.slane %v616_v28, 4 }
  0x89   :  { %v193_v20 = vmax.f32 %v191_v2, %v192_v12  ;;  %v179_v21 = vmax.f32 %v177_v3, %v178_v13  ;;  %v196_v22 = vmax.f32 %v194_v8, %v195_v14  ;;  %v166_v23 = vsel %vm158_vm1, %v1546_v19, -inf  ;;  %v82_v24 = vpop.xlane.xlu2 %81  ;;  %v91_v25 = vpop.xlane.xlu1 %90 }
  0x8a   :  { %v182_v26 = vmax.f32 %v180_v15, %v181_v18  ;;  %v167_v27 = vrot.slane %v166_v23, 4  ;;  %vm104_vm15 = vcmp.ge.f32.partialorder %v82_v24, 0.0  ;;  %v165_v29 = vmax.f32 %v163_v7, %v164_v17  ;;  %v88_v44 = vpop.xlane.xlu0 %87 }
  0x8b   :  { %v197_v32 = vrot.slane %v196_v22, 2  ;;  %v116_v34 = vmul.f32 0.01, %v82_v24  ;;  %v247_v36 = vsub.f32 %v1493_v30, %v193_v20  ;;  %v245_v41 = vsub.f32 %v1497_v31, %v179_v21 }
  0x8c   :  { %v183_v39 = vrot.slane %v182_v26, 2  ;;  %v168_v40 = vmax.f32 %v166_v23, %v167_v27  ;;  %vm107_vm4 = vcmp.ge.f32.partialorder %v91_v25, 0.0  ;;  %v243_v30 = vsub.f32 %v1510_v38, %v165_v29  ;;  %v1574_v38 = vld [vmem:[%s2390_s1 + $0x50] sm:$0x3f] }
  0x8d   :  { %v198_v42 = vmax.f32 %v196_v22, %v197_v32  ;;  %v128_v43 = vsel %vm104_vm15, %v82_v24, %v116_v34  ;;  %v119_v31 = vmul.f32 0.01, %v91_v25  ;;  %v263_v53 = vmul.f32 1.442695, %v247_v36 }
  0x8e   :  { %v184_v47 = vmax.f32 %v182_v26, %v183_v39  ;;  %v169_v49 = vrot.slane %v168_v40, 2  ;;  %v1564_v50 = vsel %vm140_vm14, %v128_v43, -1e+30  ;;  %v259_v59 = vmul.f32 1.442695, %v245_v41 }
  0x8f   :  { %v199_v51 = vrot.slane %v198_v42, 1  ;;  %v201_v52 = vsel %vm158_vm1, %v1564_v50, -inf  ;;  %v131_v62 = vsel %vm107_vm4, %v91_v25, %v119_v31  ;;  %vm106_vm7 = vcmp.ge.f32.partialorder %v88_v44, 0.0 }
  0x90   :  { %v185_v54 = vrot.slane %v184_v47, 1  ;;  %v170_v55 = vmax.f32 %v168_v40, %v169_v49  ;;  %v202_v57 = vrot.slane %v201_v52, 4  ;;  %v1578_v3 = vsel %vm143_vm2, %v131_v62, -1e+30 }
  0x91   :  { %v200_v61 = vmax.f32 %v198_v42, %v199_v51  ;;  %v97_v63 = vpop.xlane.xlu2 %96  ;;  %v255_v5 = vmul.f32 1.442695, %v243_v30  ;;  %v222_v8 = vsel %vm158_vm1, %v1578_v3, -inf  ;;  %v118_v10 = vmul.f32 0.01, %v88_v44  ;;  %v85_v12 = vpop.xlane.xlu1 %84 }
  0x92   :  { %v186_v0 = vmax.f32 %v184_v47, %v185_v54  ;;  %v171_v1 = vrot.slane %v170_v55, 1  ;;  %v203_v2 = vmax.f32 %v201_v52, %v202_v57  ;;  %v223_v15 = vrot.slane %v222_v8, 4  ;;  %v94_v25 = vpop.xlane.xlu0 %93 }
  0x93   :  { %v248_v7 = vsub.f32 %v1519_v4, %v200_v61  ;;  %vm109_vm8 = vcmp.ge.f32.partialorder %v97_v63, 0.0  ;;  %vm144_vm9 = vcmp.gt.f32.partialorder %v1574_v38, 0.0  ;;  %v130_v18 = vsel %vm106_vm7, %v88_v44, %v118_v10 }
  0x94   :  { %v246_v13 = vsub.f32 %v1530_v9, %v186_v0  ;;  %v204_v14 = vrot.slane %v203_v2, 2  ;;  %v172_v17 = vmax.f32 %v170_v55, %v171_v1  ;;  %v121_v20 = vmul.f32 0.01, %v97_v63 }
  0x95   :  { %v618_v21 = vadd.f32 %v617_v46, %v616_v28  ;;  %1247 = vpow2.f32 %v263_v53  ;;  %v224_v4 = vmax.f32 %v222_v8, %v223_v15  ;;  %vm105_vm10 = vcmp.ge.f32.partialorder %v85_v12, 0.0 }
  0x96   :  { %v205_v22 = vmax.f32 %v203_v2, %v204_v14  ;;  %1249 = vpow2.f32 %v259_v59  ;;  %v1588_v23 = vsel %vm142_vm3, %v130_v18, -1e+30  ;;  %v133_v9 = vsel %vm109_vm8, %v97_v63, %v121_v20 }
  0x97   :  { %v117_v24 = vmul.f32 0.01, %v85_v12  ;;  %1251 = vpow2.f32 %v255_v5  ;;  %v1590_v26 = vmul.f32 1.442695, %v248_v7  ;;  %v261_v27 = vmul.f32 1.442695, %v246_v13 }
  0x98   :  { %v225_v29 = vrot.slane %v224_v4, 2  ;;  %v244_v32 = vsub.f32 %v1546_v19, %v172_v17  ;;  %v215_v28 = vsel %vm158_vm1, %v1588_v23, -inf  ;;  %v1597_v34 = vsel %vm145_vm5, %v133_v9, -1e+30 }
  0x99   :  { %v129_v36 = vsel %vm105_vm10, %v85_v12, %v117_v24  ;;  %v206_v39 = vrot.slane %v205_v22, 1  ;;  %v216_v41 = vrot.slane %v215_v28, 4  ;;  %vm108_vm11 = vcmp.ge.f32.partialorder %v94_v25, 0.0 }
  0x9a   :  { %v226_v40 = vmax.f32 %v224_v4, %v225_v29  ;;  %v236_v42 = vsel %vm158_vm1, %v1597_v34, -inf  ;;  %v1603_v43 = vsel %vm141_vm6, %v129_v36, -1e+30  ;;  %v120_v19 = vmul.f32 0.01, %v94_v25 }
  0x9b   :  { %v619_v44 = vrot.slane %v618_v21, 2  ;;  %v1605_v46 = vpop.eup %1247  ;;  %1253 = vpow2.f32 %v261_v27  ;;  %v217_v49 = vmax.f32 %v215_v28, %v216_v41  ;;  %v237_v30 = vrot.slane %v236_v42, 4 }
  0x9c   :  { %v227_v47 = vrot.slane %v226_v40, 1  ;;  %v1607_v51 = vpop.eup %1249  ;;  %v208_v52 = vsel %vm158_vm1, %v1603_v43, -inf  ;;  %v132_v31 = vsel %vm108_vm11, %v94_v25, %v120_v19  ;;  %v588_v54 = vsel %vm158_vm1, %v1502_v33, 0.0 }
  0x9d   :  { %v620_v53 = vadd.f32 %v619_v44, %v618_v21  ;;  %v1613_v55 = vpop.eup %1251  ;;  %v207_v57 = vmax.f32 %v205_v22, %v206_v39  ;;  %v218_v61 = vrot.slane %v217_v49, 2  ;;  %v238_v62 = vmax.f32 %v236_v42, %v237_v30 }
  0x9e   :  { %v228_v59 = vmax.f32 %v226_v40, %v227_v47  ;;  %v209_v63 = vrot.slane %v208_v52, 4  ;;  %v1617_v0 = vsel %vm144_vm9, %v132_v31, -1e+30  ;;  %v589_v2 = vrot.slane %v588_v54, 4 }
  0x9f   :  { %v621_v1 = vrot.slane %v620_v53, 1  ;;  %v257_v5 = vmul.f32 1.442695, %v244_v32  ;;  %v219_v8 = vmax.f32 %v217_v49, %v218_v61  ;;  %v239_v10 = vrot.slane %v238_v62, 2 }
  0xa0   :  { %v252_v7 = vsub.f32 %v1578_v3, %v228_v59  ;;  %v210_v12 = vmax.f32 %v208_v52, %v209_v63  ;;  %v229_v13 = vsel %vm158_vm1, %v1617_v0, -inf  ;;  %v590_v15 = vadd.f32 %v589_v2, %v588_v54 }
  0xa1   :  { %v622_v14 = vadd.f32 %v621_v1, %v620_v53  ;;  %v1254_v17 = vpop.eup %1253  ;;  %v249_v18 = vsub.f32 %v1564_v50, %v207_v57  ;;  %v220_v20 = vrot.slane %v219_v8, 1  ;;  %v240_v21 = vmax.f32 %v238_v62, %v239_v10 }
  0xa2   :  { %v230_v22 = vrot.slane %v229_v13, 4  ;;  %v211_v4 = vrot.slane %v210_v12, 2  ;;  %v591_v24 = vrot.slane %v590_v15, 2  ;;  %v609_v3 = vsel %vm158_vm1, %v1524_v6, 0.0 }
  0xa3   :  { %v814_v9 = vmax.f32 %v622_v14, 1.0  ;;  %v273_v25 = vmul.f32 1.442695, %v252_v7  ;;  %v221_v27 = vmax.f32 %v219_v8, %v220_v20  ;;  %v241_v29 = vrot.slane %v240_v21, 1 }
  0xa4   :  { %v231_v32 = vmax.f32 %v229_v13, %v230_v22  ;;  %v212_v28 = vmax.f32 %v210_v12, %v211_v4  ;;  %v592_v36 = vadd.f32 %v591_v24, %v590_v15  ;;  %v610_v39 = vrot.slane %v609_v3, 4 }
  0xa5   :  { %856 = vperm.xlu1 %1243, %v814_v9   ;;  %v630_v50 = vsel %vm158_vm1, %v1535_v11, 0.0  ;;  %v251_v40 = vsub.f32 %v1588_v23, %v221_v27  ;;  %v242_v41 = vmax.f32 %v240_v21, %v241_v29  ;;  %v644_v30 = vsel %vm158_vm1, %v1557_v35, 0.0 }
  0xa6   :  { %v232_v42 = vrot.slane %v231_v32, 2  ;;  %v631_v19 = vrot.slane %v630_v50, 4  ;;  %v213_v44 = vrot.slane %v212_v28, 1  ;;  %v593_v47 = vrot.slane %v592_v36, 1 }
  0xa7   :  { %v611_v49 = vadd.f32 %v610_v39, %v609_v3  ;;  %1255 = vpow2.f32 %v257_v5  ;;  %v271_v52 = vmul.f32 1.442695, %v251_v40  ;;  %v267_v54 = vmul.f32 1.442695, %v249_v18 }
  0xa8   :  { %v233_v31 = vmax.f32 %v231_v32, %v232_v42  ;;  %v632_v53 = vadd.f32 %v631_v19, %v630_v50  ;;  %v594_v57 = vadd.f32 %v593_v47, %v592_v36  ;;  %v645_v61 = vrot.slane %v644_v30, 4 }
  0xa9   :  { %v612_v59 = vrot.slane %v611_v49, 2  ;;  %1257 = vpow2.f32 %v273_v25  ;;  %v254_v23 = vsub.f32 %v1597_v34, %v242_v41  ;;  %v214_v62 = vmax.f32 %v212_v28, %v213_v44 }
  0xaa   :  { %v633_v63 = vrot.slane %v632_v53, 2  ;;  %1259 = vpow2.f32 %v271_v52  ;;  %v810_v1 = vmax.f32 %v594_v57, 1.0  ;;  %v646_v7 = vadd.f32 %v645_v61, %v644_v30 }
  0xab   :  { %v613_v2 = vadd.f32 %v612_v59, %v611_v49  ;;  %1261 = vpow2.f32 %v1590_v26  ;;  %v234_v8 = vrot.slane %v233_v31, 1  ;;  %v637_v10 = vsel %vm158_vm1, %v1574_v38, 0.0 }
  0xac   :  { %v634_v5 = vadd.f32 %v633_v63, %v632_v53  ;;  %1263 = vpow2.f32 %v267_v54  ;;  %836 = vperm.xlu2 %1244, %v810_v1   ;;  %v647_v13 = vrot.slane %v646_v7, 2  ;;  %v638_v14 = vrot.slane %v637_v10, 4 }
  0xad   :  { %v614_v12 = vrot.slane %v613_v2, 1  ;;  %v1256_v15 = vpop.eup %1255  ;;  %v250_v34 = vsub.f32 %v1603_v43, %v214_v62  ;;  %v1637_v20 = vmul.f32 %v1613_v55, %v1449_v37  ;;  %v1640_v26 = vmul.f32 %v1254_v17, %v1502_v33 }
  0xae   :  { %v635_v18 = vrot.slane %v634_v5, 1  ;;  %v277_v21 = vmul.f32 1.442695, %v254_v23  ;;  %v648_v4 = vadd.f32 %v647_v13, %v646_v7  ;;  %v639_v9 = vadd.f32 %v638_v14, %v637_v10 }
  0xaf   :  { %v615_v22 = vadd.f32 %v614_v12, %v613_v2  ;;  %v1258_v24 = vpop.eup %1257  ;;  %v1642_v3 = vmax.f32 %v233_v31, %v234_v8  ;;  %v291_v27 = vsel %vm158_vm1, %v1637_v20, 0.0  ;;  %v312_v43 = vsel %vm158_vm1, %v1640_v26, 0.0 }
  0xb0   :  { %v636_v25 = vadd.f32 %v635_v18, %v634_v5  ;;  %v1260_v29 = vpop.eup %1259  ;;  %v649_v55 = vrot.slane %v648_v4, 1  ;;  %v640_v32 = vrot.slane %v639_v9, 2  ;;  %v292_v33 = vrot.slane %v291_v27, 4 }
  0xb1   :  { %v813_v37 = vmax.f32 %v615_v22, 1.0  ;;  %v1648_v17 = vpop.eup %1261  ;;  %v269_v28 = vmul.f32 1.442695, %v250_v34  ;;  %v313_v39 = vrot.slane %v312_v43, 4  ;;  %v1651_v50 = vmul.f32 %v1256_v15, %v1456_v45 }
  0xb2   :  { %v816_v36 = vmax.f32 %v636_v25, 1.0  ;;  %v1264_v40 = vpop.eup %1263  ;;  %v650_v41 = vadd.f32 %v649_v55, %v648_v4  ;;  %v641_v42 = vadd.f32 %v640_v32, %v639_v9  ;;  %v293_v19 = vadd.f32 %v292_v33, %v291_v27 }
  0xb3   :  { %851 = vperm.xlu0 %1242, %v813_v37   ;;  %v1654_v44 = vmul.f32 %v1258_v24, %v1535_v11  ;;  %v314_v47 = vadd.f32 %v313_v39, %v312_v43  ;;  %v298_v49 = vsel %vm158_vm1, %v1651_v50, 0.0  ;;  %v1660_v30 = vmul.f32 %v1607_v51, %v1480_v60 }
  0xb4   :  { %v1663_v52 = vmul.f32 %v1260_v29, %v1470_v56  ;;  %866 = vperm.xlu2 %1244, %v816_v36   ;;  %v818_v45 = vmax.f32 %v650_v41, 1.0  ;;  %v642_v31 = vrot.slane %v641_v42, 1  ;;  %v294_v53 = vrot.slane %v293_v19, 2 }
  0xb5   :  { %v299_v54 = vrot.slane %v298_v49, 4  ;;  %v315_v57 = vrot.slane %v314_v47, 2  ;;  %v354_v11 = vsel %vm158_vm1, %v1654_v44, 0.0  ;;  %v305_v59 = vsel %vm158_vm1, %v1660_v30, 0.0 }
  0xb6   :  { %v347_v61 = vsel %vm158_vm1, %v1663_v52, 0.0  ;;  %v643_v60 = vadd.f32 %v642_v31, %v641_v42  ;;  %v295_v51 = vadd.f32 %v294_v53, %v293_v19  ;;  %v355_v56 = vrot.slane %v354_v11, 4 }
  0xb7   :  { %v300_v23 = vadd.f32 %v299_v54, %v298_v49  ;;  %v316_v62 = vadd.f32 %v315_v57, %v314_v47  ;;  %v306_v63 = vrot.slane %v305_v59, 4  ;;  %v348_v1 = vrot.slane %v347_v61, 4 }
  0xb8   :  { %v1672_v2 = vmul.f32 %v1264_v40, %v1524_v6  ;;  %v817_v7 = vmax.f32 %v643_v60, 1.0  ;;  %v296_v8 = vrot.slane %v295_v51, 1  ;;  %v356_v10 = vadd.f32 %v355_v56, %v354_v11 }
  0xb9   :  { %v301_v5 = vrot.slane %v300_v23, 2  ;;  %v317_v12 = vrot.slane %v316_v62, 1  ;;  %v307_v13 = vadd.f32 %v306_v63, %v305_v59  ;;  %v349_v14 = vadd.f32 %v348_v1, %v347_v61 }
  0xba   :  { %v333_v15 = vsel %vm158_vm1, %v1672_v2, 0.0  ;;  %1265 = vpow2.f32 %v277_v21  ;;  %v297_v34 = vadd.f32 %v296_v8, %v295_v51  ;;  %v357_v22 = vrot.slane %v356_v10, 2 }
  0xbb   :  { %876 = vperm.xlu0 %1242, %v818_v45   ;;  %v302_v18 = vadd.f32 %v301_v5, %v300_v23  ;;  %v253_v4 = vsub.f32 %v1617_v0, %v1642_v3  ;;  %v318_v6 = vadd.f32 %v317_v12, %v316_v62  ;;  %v308_v9 = vrot.slane %v307_v13, 2 }
  0xbc   :  { %v350_v24 = vrot.slane %v349_v14, 2  ;;  %871 = vperm.xlu2 %1244, %v817_v7   ;;  %v1678_v25 = vadd.f32 1e-16, %v297_v34  ;;  %v358_v43 = vadd.f32 %v357_v22, %v356_v10  ;;  %v334_v29 = vrot.slane %v333_v15, 4 }
  0xbd   :  { %v303_v27 = vrot.slane %v302_v18, 1  ;;  %1267 = vpow2.f32 %v269_v28  ;;  %v1680_v37 = vadd.f32 1e-16, %v318_v6  ;;  %v309_v21 = vadd.f32 %v308_v9, %v307_v13 }
  0xbe   :  { %1269 = vrcp.f32 %v1678_v25  ;;  %v351_v55 = vadd.f32 %v350_v24, %v349_v14  ;;  %v275_v32 = vmul.f32 1.442695, %v253_v4  ;;  %v359_v33 = vrot.slane %v358_v43, 1 }
  0xbf   :  { %1271 = vrcp.f32 %v1680_v37  ;;  %v304_v3 = vadd.f32 %v303_v27, %v302_v18  ;;  %v1686_v36 = vadd.f32 %v334_v29, %v333_v15  ;;  %v1690_v39 = vmul.f32 %v1605_v46, %v1461_v48 }
  0xc0   :  { %v1684_v0 = vpop.eup %1265  ;;  %v396_v28 = vand.u32 2147483647, %v1678_v25  ;;  %v398_v40 = vand.u32 2147483648, %v1678_v25  ;;  %v441_v41 = vand.u32 2147483647, %v1680_v37  ;;  %v310_v42 = vrot.slane %v309_v21, 1 }
  0xc1   :  { %v443_v19 = vand.u32 2147483648, %v1680_v37  ;;  %v1696_v47 = vadd.f32 1e-16, %v304_v3  ;;  %v360_v49 = vadd.f32 %v359_v33, %v358_v43  ;;  %v352_v45 = vrot.slane %v351_v55, 1 }
  0xc2   :  { %1273 = vpow2.f32 %v275_v32  ;;  %v311_v53 = vadd.f32 %v310_v42, %v309_v21  ;;  %vm392_vm12 = vweird.f32 %v1678_v25  ;;  %vm437_vm13 = vweird.f32 %v1680_v37 }
  0xc3   :  { %v1698_v31 = vpop.eup %1267  ;;  %1275 = vrcp.f32 %v1696_v47  ;;  %v1705_v48 = vsel %vm158_vm1, %v1690_v39, 0.0  ;;  %vm1708_vm14 = vcmp.eq.f32.partialorder %v396_v28, 8.507059e+37  ;;  %v399_v59 = vor.u32 1.1754944e-38, %v398_v40 }
  0xc4   :  { %v1270_v54 = vpop.eup %1269  ;;  %v1712_v61 = vadd.f32 1e-16, %v360_v49  ;;  %v1714_v60 = vadd.f32 1e-16, %v311_v53  ;;  %vm1717_vm15 = vcmp.eq.f32.partialorder %v441_v41, 8.507059e+37  ;;  %v444_v56 = vor.u32 1.1754944e-38, %v443_v19 }
  0xc5   :  { %v1272_v46 = vpop.eup %1271  ;;  %v388_v57 = vmul.f32 %v1270_v54, %v1678_v25  ;;  %v353_v62 = vadd.f32 %v352_v45, %v351_v55  ;;  %v336_v63 = vrot.slane %v1686_v36, 2  ;;  %v411_v7 = vand.u32 2147483647, %v1696_v47 }
  0xc6   :  { %v433_v51 = vmul.f32 %v1272_v46, %v1680_v37  ;;  %v413_v8 = vand.u32 2147483648, %v1696_v47  ;;  %1277 = vrcp.f32 %v1712_v61  ;;  %v533_v10 = vand.u32 2147483648, %v1712_v61 }
  0xc7   :  { %v389_v1 = vsub.f32 1.0, %v388_v57  ;;  %1279 = vrcp.f32 %v1714_v60  ;;  %v320_v12 = vrot.slane %v1705_v48, 4  ;;  %vm393_vm2 = vweird.f32 %v1270_v54 }
  0xc8   :  { %v434_v5 = vsub.f32 1.0, %v433_v51  ;;  %v1728_v13 = vpop.eup %1273  ;;  %vm407_vm3 = vweird.f32 %v1696_v47  ;;  %v1733_v15 = vmul.f32 %v1648_v17, %v1475_v58  ;;  %vm438_vm4 = vweird.f32 %v1272_v46  ;;  %vm394_vm6 = vmor %vm392_vm12, %vm393_vm2 }
  0xc9   :  { %v390_v14 = vmul.f32 %v1270_v54, %v389_v1  ;;  %v1276_v34 = vpop.eup %1275  ;;  %v428_v22 = vand.u32 2147483648, %v1714_v60  ;;  %v1736_v4 = vadd.f32 1e-16, %v353_v62  ;;  %vm1739_vm5 = vcmp.eq.f32.partialorder %v411_v7, 8.507059e+37  ;;  %vm439_vm8 = vmor %vm437_vm13, %vm438_vm4 }
  0xca   :  { %v435_v18 = vmul.f32 %v1272_v46, %v434_v5  ;;  %v403_v9 = vmul.f32 %v1276_v34, %v1696_v47  ;;  %v414_v27 = vor.u32 1.1754944e-38, %v413_v8  ;;  %v531_v43 = vand.u32 2147483647, %v1712_v61 }
  0xcb   :  { %v391_v6 = vadd.f32 %v1270_v54, %v390_v14  ;;  %vm527_vm7 = vweird.f32 %v1712_v61  ;;  %v534_v17 = vor.u32 1.1754944e-38, %v533_v10  ;;  %v426_v29 = vand.u32 2147483647, %v1714_v60 }
  0xcc   :  { %v436_v58 = vadd.f32 %v1272_v46, %v435_v18  ;;  %1281 = vrcp.f32 %v1736_v4  ;;  %v1278_v21 = vpop.eup %1277  ;;  %v404_v32 = vsub.f32 1.0, %v403_v9  ;;  %vm408_vm9 = vweird.f32 %v1276_v34 }
  0xcd   :  { %v395_v55 = vsel %vm394_vm6, %v1270_v54, %v391_v6  ;;  %vm422_vm10 = vweird.f32 %v1714_v60  ;;  %v337_v25 = vadd.f32 %v336_v63, %v1686_v36  ;;  %v1280_v3 = vpop.eup %1279  ;;  %v523_v40 = vmul.f32 %v1278_v21, %v1712_v61  ;;  %vm409_vm13 = vmor %vm407_vm3, %vm408_vm9 }
  0xce   :  { %v400_v33 = vsel %vm1708_vm14, %v399_v59, %v395_v55  ;;  %v440_v28 = vsel %vm439_vm8, %v1272_v46, %v436_v58  ;;  %v429_v41 = vor.u32 1.1754944e-38, %v428_v22  ;;  %v405_v19 = vmul.f32 %v1276_v34, %v404_v32 }
  0xcf   :  { %v401_v42 = vmul.f32 %v400_v33, %v1637_v20  ;;  %v445_v37 = vsel %vm1717_vm15, %v444_v56, %v440_v28  ;;  %vm1760_vm11 = vcmp.eq.f32.partialorder %v531_v43, 8.507059e+37  ;;  %v418_v36 = vmul.f32 %v1280_v3, %v1714_v60 }
  0xd0   :  { %v524_v45 = vsub.f32 1.0, %v523_v40  ;;  %vm528_vm12 = vweird.f32 %v1278_v21  ;;  %v516_v53 = vand.u32 2147483647, %v1736_v4  ;;  %v518_v54 = vand.u32 2147483648, %v1736_v4 }
  0xd1   :  { %653 = vperm.xlu2 %1244, %v401_v42   ;;  %v446_v46 = vmul.f32 %v445_v37, %v1640_v26  ;;  %v406_v20 = vadd.f32 %v1276_v34, %v405_v19  ;;  %v419_v57 = vsub.f32 1.0, %v418_v36  ;;  %v338_v11 = vrot.slane %v337_v25, 1  ;;  %vm529_vm15 = vmor %vm527_vm7, %vm528_vm12 }
  0xd2   :  { %v1282_v59 = vpop.eup %1281  ;;  %v525_v51 = vmul.f32 %v1278_v21, %v524_v45  ;;  %vm423_vm14 = vweird.f32 %v1280_v3  ;;  %v321_v23 = vadd.f32 %v320_v12, %v1705_v48  ;;  %v1774_v56 = vmul.f32 %v1698_v31, %v1542_v16 }
  0xd3   :  { %v410_v62 = vsel %vm409_vm13, %v1276_v34, %v406_v20  ;;  %v420_v63 = vmul.f32 %v1280_v3, %v419_v57  ;;  %v508_v26 = vmul.f32 %v1282_v59, %v1736_v4  ;;  %v1779_v1 = vmul.f32 %v1684_v0, %v1557_v35  ;;  %vm424_vm2 = vmor %vm422_vm10, %vm423_vm14 }
  0xd4   :  { %v415_v47 = vsel %vm1739_vm5, %v414_v27, %v410_v62  ;;  %v526_v7 = vadd.f32 %v1278_v21, %v525_v51  ;;  %v339_v8 = vadd.f32 %v338_v11, %v337_v25  ;;  %v322_v5 = vrot.slane %v321_v23, 2 }
  0xd5   :  { %v416_v48 = vmul.f32 %v415_v47, %v1651_v50  ;;  %v421_v16 = vadd.f32 %v1280_v3, %v420_v63  ;;  %v509_v31 = vsub.f32 1.0, %v508_v26  ;;  %v340_v10 = vsel %vm158_vm1, %v1774_v56, 0.0 }
  0xd6   :  { %v530_v12 = vsel %vm529_vm15, %v1278_v21, %v526_v7  ;;  %v381_v35 = vadd.f32 1e-16, %v339_v8  ;;  %v323_v0 = vadd.f32 %v322_v5, %v321_v23  ;;  %v341_v14 = vrot.slane %v340_v10, 4 }
  0xd7   :  { %658 = vperm.xlu1 %1243, %v416_v48   ;;  %v425_v34 = vsel %vm424_vm2, %v1280_v3, %v421_v16  ;;  %v510_v50 = vmul.f32 %v1282_v59, %v509_v31  ;;  %vm513_vm3 = vweird.f32 %v1282_v59  ;;  %v368_v61 = vsel %vm158_vm1, %v1779_v1, 0.0 }
  0xd8   :  { %v535_v18 = vsel %vm1760_vm11, %v534_v17, %v530_v12  ;;  %vm427_vm4 = vcmp.eq.f32.partialorder %v426_v29, 8.507059e+37  ;;  %1283 = vrcp.f32 %v381_v35  ;;  %vm512_vm5 = vweird.f32 %v1736_v4 }
  0xd9   :  { %668 = vperm.xlu2 %1244, %v446_v46   ;;  %v430_v22 = vsel %vm427_vm4, %v429_v41, %v425_v34  ;;  %v511_v6 = vadd.f32 %v1282_v59, %v510_v50  ;;  %v519_v60 = vor.u32 1.1754944e-38, %v518_v54  ;;  %vm514_vm6 = vmor %vm512_vm5, %vm513_vm3  ;;  %v324_v9 = vrot.slane %v323_v0, 1 }
  0xda   :  { %v342_v24 = vadd.f32 %v341_v14, %v340_v10  ;;  %v369_v27 = vrot.slane %v368_v61, 4  ;;  %v326_v43 = vsel %vm158_vm1, %v1733_v15, 0.0  ;;  %v536_v58 = vmul.f32 %v535_v18, %v1654_v44 }
  0xdb   :  { %v515_v21 = vsel %vm514_vm6, %v1282_v59, %v511_v6  ;;  %vm517_vm7 = vcmp.eq.f32.partialorder %v516_v53, 8.507059e+37  ;;  %v327_v17 = vrot.slane %v326_v43, 4  ;;  %v325_v55 = vadd.f32 %v324_v9, %v323_v0 }
  0xdc   :  { %v520_v29 = vsel %vm517_vm7, %v519_v60, %v515_v21  ;;  %v343_v32 = vrot.slane %v342_v24, 2  ;;  %v370_v25 = vadd.f32 %v369_v27, %v368_v61  ;;  %v431_v3 = vmul.f32 %v430_v22, %v1660_v30 }
  0xdd   :  { %v521_v4 = vmul.f32 %v520_v29, %v1663_v52  ;;  %v328_v33 = vadd.f32 %v327_v17, %v326_v43  ;;  %v1804_v28 = vmul.f32 %v1728_v13, %v1574_v38  ;;  %v379_v41 = vadd.f32 1e-16, %v325_v55 }
  0xde   :  { %v1284_v40 = vpop.eup %1283  ;;  %v344_v42 = vadd.f32 %v343_v32, %v342_v24  ;;  %v371_v44 = vrot.slane %v370_v25, 2  ;;  %vm482_vm8 = vweird.f32 %v381_v35  ;;  %v486_v30 = vand.u32 2147483647, %v381_v35 }
  0xdf   :  { %663 = vperm.xlu1 %1243, %v431_v3   ;;  %693 = vperm.xlu0 %1242, %v521_v4   ;;  %v478_v37 = vmul.f32 %v1284_v40, %v381_v35  ;;  %v329_v19 = vrot.slane %v328_v33, 2  ;;  %v361_v49 = vsel %vm158_vm1, %v1804_v28, 0.0  ;;  %vm483_vm9 = vweird.f32 %v1284_v40 }
  0xe0   :  { %v488_v52 = vand.u32 2147483648, %v381_v35  ;;  %1285 = vrcp.f32 %v379_v41  ;;  %v345_v38 = vrot.slane %v344_v42, 1  ;;  %v372_v13 = vadd.f32 %v371_v44, %v370_v25  ;;  %vm484_vm10 = vmor %vm482_vm8, %vm483_vm9 }
  0xe1   :  { %698 = vperm.xlu2 %1244, %v536_v58   ;;  %v479_v36 = vsub.f32 1.0, %v478_v37  ;;  %v330_v45 = vadd.f32 %v329_v19, %v328_v33  ;;  %v362_v53 = vrot.slane %v361_v49, 4  ;;  %vm487_vm11 = vcmp.eq.f32.partialorder %v486_v30, 8.507059e+37 }
  0xe2   :  { %v346_v46 = vadd.f32 %v345_v38, %v344_v42  ;;  %v373_v20 = vrot.slane %v372_v13, 1  ;;  %v489_v11 = vor.u32 1.1754944e-38, %v488_v52  ;;  %v458_v12 = vand.u32 2147483648, %v379_v41 }
  0xe3   :  { %v480_v54 = vmul.f32 %v1284_v40, %v479_v36  ;;  %v331_v57 = vrot.slane %v330_v45, 1  ;;  %v363_v59 = vadd.f32 %v362_v53, %v361_v49  ;;  %v456_v14 = vand.u32 2147483647, %v379_v41 }
  0xe4   :  { %v382_v23 = vadd.f32 1e-16, %v346_v46  ;;  %v374_v62 = vadd.f32 %v373_v20, %v372_v13  ;;  %vm452_vm12 = vweird.f32 %v379_v41  ;;  %v459_v18 = vor.u32 1.1754944e-38, %v458_v12 }
  0xe5   :  { %v481_v51 = vadd.f32 %v1284_v40, %v480_v54  ;;  %v332_v63 = vadd.f32 %v331_v57, %v330_v45  ;;  %v364_v47 = vrot.slane %v363_v59, 2  ;;  %vm457_vm14 = vcmp.eq.f32.partialorder %v456_v14, 8.507059e+37 }
  0xe6   :  { %v1286_v26 = vpop.eup %1285  ;;  %1287 = vrcp.f32 %v382_v23  ;;  %v386_v31 = vadd.f32 1e-16, %v374_v62  ;;  %v501_v43 = vand.u32 2147483647, %v382_v23  ;;  %v503_v58 = vand.u32 2147483648, %v382_v23 }
  0xe7   :  { %v485_v7 = vsel %vm484_vm10, %v1284_v40, %v481_v51  ;;  %v448_v8 = vmul.f32 %v1286_v26, %v379_v41  ;;  %v1810_v10 = vadd.f32 1e-16, %v332_v63  ;;  %v365_v35 = vadd.f32 %v364_v47, %v363_v59 }
  0xe8   :  { %v490_v5 = vsel %vm487_vm11, %v489_v11, %v485_v7  ;;  %vm453_vm1 = vweird.f32 %v1286_v26  ;;  %1289 = vrcp.f32 %v386_v31  ;;  %vm497_vm15 = vweird.f32 %v382_v23 }
  0xe9   :  { %v491_v48 = vmul.f32 %v490_v5, %v1672_v2  ;;  %v449_v16 = vsub.f32 1.0, %v448_v8  ;;  %1291 = vrcp.f32 %v1810_v10  ;;  %v366_v61 = vrot.slane %v365_v35, 1  ;;  %vm454_vm13 = vmor %vm452_vm12, %vm453_vm1 }
  0xea   :  { %vm557_vm3 = vweird.f32 %v386_v31  ;;  %v563_v32 = vand.u32 2147483648, %v386_v31  ;;  %v561_v33 = vand.u32 2147483647, %v386_v31  ;;  %vm502_vm6 = vcmp.eq.f32.partialorder %v501_v43, 8.507059e+37 }
  0xeb   :  { %683 = vperm.xlu2 %1244, %v491_v48   ;;  %v450_v0 = vmul.f32 %v1286_v26, %v449_v16  ;;  %v367_v6 = vadd.f32 %v366_v61, %v365_v35  ;;  %v471_v44 = vand.u32 2147483647, %v1810_v10  ;;  %v473_v37 = vand.u32 2147483648, %v1810_v10  ;;  %v1835_v16 = vpop.permute.xlu0 %821 }
  0xec   :  { %v1288_v34 = vpop.eup %1287  ;;  %v564_v30 = vor.u32 1.1754944e-38, %v563_v32  ;;  %vm562_vm9 = vcmp.eq.f32.partialorder %v561_v33, 8.507059e+37  ;;  %vm467_vm10 = vweird.f32 %v1810_v10 }
  0xed   :  { %v451_v50 = vadd.f32 %v1286_v26, %v450_v0  ;;  %v493_v2 = vmul.f32 %v1288_v34, %v382_v23  ;;  %v385_v21 = vadd.f32 1e-16, %v367_v6  ;;  %vm498_vm2 = vweird.f32 %v1288_v34 }
  0xee   :  { %v1290_v24 = vpop.eup %1289  ;;  %vm499_vm5 = vmor %vm497_vm15, %vm498_vm2  ;;  %v474_v54 = vor.u32 1.1754944e-38, %v473_v37  ;;  %vm472_vm1 = vcmp.eq.f32.partialorder %v471_v44, 8.507059e+37 }
  0xef   :  { %v455_v22 = vsel %vm454_vm13, %v1286_v26, %v451_v50  ;;  %v494_v9 = vsub.f32 1.0, %v493_v2  ;;  %v1292_v17 = vpop.eup %1291  ;;  %v553_v55 = vmul.f32 %v1290_v24, %v386_v31  ;;  %1293 = vrcp.f32 %v385_v21  ;;  %v1837_v31 = vpop.permute.xlu1 %826 }
  0xf0   :  { %v460_v60 = vsel %vm457_vm14, %v459_v18, %v455_v22  ;;  %v463_v25 = vmul.f32 %v1292_v17, %v1810_v10  ;;  %vm558_vm4 = vweird.f32 %v1290_v24  ;;  %vm468_vm8 = vweird.f32 %v1292_v17 }
  0xf1   :  { %v461_v27 = vmul.f32 %v460_v60, %v1690_v39  ;;  %v495_v29 = vmul.f32 %v1288_v34, %v494_v9  ;;  %v554_v4 = vsub.f32 1.0, %v553_v55  ;;  %v504_v39 = vor.u32 1.1754944e-38, %v503_v58  ;;  %vm1818_vm7 = vmor %vm557_vm3, %vm558_vm4 }
  0xf2   :  { %v464_v40 = vsub.f32 1.0, %v463_v25  ;;  %vm469_vm11 = vmor %vm467_vm10, %vm468_vm8  ;;  %v548_v23 = vand.u32 2147483648, %v385_v21  ;;  %v546_v63 = vand.u32 2147483647, %v385_v21  ;;  %vm542_vm13 = vweird.f32 %v385_v21 }
  0xf3   :  { %673 = vperm.xlu1 %1243, %v461_v27   ;;  %v496_v3 = vadd.f32 %v1288_v34, %v495_v29  ;;  %v555_v42 = vmul.f32 %v1290_v24, %v554_v4  ;;  %v1844_v35 = vpop.permute.xlu0 %841  ;;  %v905_v25 = vand.u32 2147483648, %v1837_v31 }
  0xf4   :  { %v465_v52 = vmul.f32 %v1292_v17, %v464_v40  ;;  %v549_v47 = vor.u32 1.1754944e-38, %v548_v23  ;;  %vm547_vm15 = vcmp.eq.f32.partialorder %v546_v63, 8.507059e+37 }
  0xf5   :  { %v500_v41 = vsel %vm499_vm5, %v1288_v34, %v496_v3  ;;  %v556_v38 = vadd.f32 %v1290_v24, %v555_v42  ;;  %v1294_v13 = vpop.eup %1293  ;;  %vm884_vm5 = vweird.f32 %v1835_v16 }
  0xf6   :  { %v505_v19 = vsel %vm502_vm6, %v504_v39, %v500_v41  ;;  %v466_v45 = vadd.f32 %v1292_v17, %v465_v52  ;;  %v538_v46 = vmul.f32 %v1294_v13, %v385_v21  ;;  %vm543_vm12 = vweird.f32 %v1294_v13 }
  0xf7   :  { %v506_v36 = vmul.f32 %v505_v19, %v1774_v56  ;;  %v560_v53 = vsel %vm1818_vm7, %v1290_v24, %v556_v38  ;;  %vm544_vm14 = vmor %vm542_vm13, %vm543_vm12  ;;  %v890_v21 = vand.u32 2147483648, %v1835_v16  ;;  %v888_v41 = vand.u32 2147483647, %v1835_v16 }
  0xf8   :  { %v565_v20 = vsel %vm562_vm9, %v564_v30, %v560_v53  ;;  %v470_v57 = vsel %vm469_vm11, %v1292_v17, %v466_v45  ;;  %v539_v56 = vsub.f32 1.0, %v538_v46  ;;  %vm899_vm6 = vweird.f32 %v1837_v31 }
  0xf9   :  { %688 = vperm.xlu0 %1242, %v506_v36   ;;  %v566_v11 = vmul.f32 %v565_v20, %v1779_v1  ;;  %v475_v59 = vsel %vm472_vm1, %v474_v54, %v470_v57  ;;  %v1829_v1 = vpop.permute.xlu2 %831  ;;  %v1903_v42 = vor.u32 1.1754944e-38, %v890_v21  ;;  %v1915_v36 = vor.u32 1.1754944e-38, %v905_v25 }
  0xfa   :  { %v476_v51 = vmul.f32 %v475_v59, %v1733_v15  ;;  %v540_v62 = vmul.f32 %v1294_v13, %v539_v56  ;;  %1295 = vrcp.f32 %v1829_v1  ;;  %vm914_vm2 = vweird.f32 %v1829_v1 }
  0xfb   :  { %708 = vperm.xlu2 %1244, %v566_v11   ;;  %1297 = vrcp.f32 %v1835_v16  ;;  %v1863_v22 = vpop.permute.xlu0 %861  ;;  %v920_v24 = vand.u32 2147483648, %v1829_v1  ;;  %vm944_vm9 = vweird.f32 %v1844_v35  ;;  %v950_v54 = vand.u32 2147483648, %v1844_v35 }
  0xfc   :  { %678 = vperm.xlu1 %1243, %v476_v51   ;;  %v541_v26 = vadd.f32 %v1294_v13, %v540_v62  ;;  %1299 = vrcp.f32 %v1837_v31 }
  0xfd   :  { %1301 = vrcp.f32 %v1844_v35  ;;  %v1894_v33 = vor.u32 1.1754944e-38, %v920_v24 }
  0xfe   :  { %v545_v7 = vsel %vm544_vm14, %v1294_v13, %v541_v26 }
  0xff   :  { %v550_v8 = vsel %vm547_vm15, %v549_v47, %v545_v7  ;;  %v1010_v7 = vand.u32 2147483648, %v1863_v22 }
 0x100   :  { %v551_v5 = vmul.f32 %v550_v8, %v1804_v28  ;;  %v1842_v12 = vpop.eup %1295  ;;  %v1846_v28 = vpop.permute.xlu1 %846 }
 0x101   :  { %v910_v0 = vmul.f32 %v1842_v12, %v1829_v1  ;;  %v1855_v50 = vpop.eup %1297  ;;  %1303 = vrcp.f32 %v1846_v28  ;;  %vm915_vm3 = vweird.f32 %v1842_v12  ;;  %v965_v46 = vand.u32 2147483648, %v1846_v28 }
 0x102   :  { %v1857_v61 = vpop.eup %1299  ;;  %v880_v2 = vmul.f32 %v1855_v50, %v1835_v16  ;;  %vm1882_vm4 = vmor %vm914_vm2, %vm915_vm3  ;;  %vm885_vm7 = vweird.f32 %v1855_v50  ;;  %vm959_vm11 = vweird.f32 %v1846_v28  ;;  %vm2001_vm3 = vcmp.eq.f32.partialorder %v888_v41, 8.507059e+37 }
 0x103   :  { %v911_v34 = vsub.f32 1.0, %v910_v0  ;;  %v895_v60 = vmul.f32 %v1857_v61, %v1837_v31  ;;  %v1870_v9 = vpop.eup %1301  ;;  %vm900_vm8 = vweird.f32 %v1857_v61  ;;  %vm1933_vm10 = vmor %vm884_vm5, %vm885_vm7  ;;  %v1966_v16 = vor.u32 1.1754944e-38, %v965_v46  ;;  %v1323_v0 = vld [vmem:[%s2389_s0] sm:$0x3f] }
 0x104   :  { %703 = vperm.xlu1 %1243, %v551_v5   ;;  %v881_v58 = vsub.f32 1.0, %v880_v2  ;;  %v940_v55 = vmul.f32 %v1870_v9, %v1844_v35  ;;  %vm1951_vm1 = vmor %vm899_vm6, %vm900_vm8  ;;  %vm945_vm12 = vweird.f32 %v1870_v9  ;;  %v1964_v5 = vor.u32 1.1754944e-38, %v950_v54 }
 0x105   :  { %v912_v18 = vmul.f32 %v1842_v12, %v911_v34  ;;  %v896_v29 = vsub.f32 1.0, %v895_v60  ;;  %vm1991_vm14 = vmor %vm944_vm9, %vm945_vm12  ;;  %vm1004_vm5 = vweird.f32 %v1863_v22 }
 0x106   :  { %v1831_v48 = vpop.permute.xlu2 %836  ;;  %v882_v40 = vmul.f32 %v1855_v50, %v881_v58  ;;  %v941_v49 = vsub.f32 1.0, %v940_v55  ;;  %2419 = vst [vmem:[#allocation6_spill] sm:$0xff] %v1964_v5 }
 0x107   :  { %1305 = vrcp.f32 %v1831_v48  ;;  %v1878_v43 = vadd.f32 %v1842_v12, %v912_v18  ;;  %v1888_v32 = vpop.eup %1303  ;;  %v897_v37 = vmul.f32 %v1857_v61, %v896_v29  ;;  %v935_v23 = vand.u32 2147483648, %v1831_v48 }
 0x108   :  { %1307 = vrcp.f32 %v1863_v22  ;;  %v955_v38 = vmul.f32 %v1888_v32, %v1846_v28  ;;  %v1926_v53 = vadd.f32 %v1855_v50, %v882_v40  ;;  %v942_v11 = vmul.f32 %v1870_v9, %v941_v49 }
 0x109   :  { %v1938_v57 = vadd.f32 %v1857_v61, %v897_v37  ;;  %v933_v26 = vand.u32 2147483647, %v1831_v48  ;;  %vm929_vm13 = vweird.f32 %v1831_v48  ;;  %v1985_v29 = vor.u32 1.1754944e-38, %v935_v23 }
 0x10a   :  { %v956_v63 = vsub.f32 1.0, %v955_v38  ;;  %v1980_v60 = vadd.f32 %v1870_v9, %v942_v11  ;;  %vm960_vm15 = vweird.f32 %v1888_v32  ;;  %v1324_v38 = vld [vmem:[%s2389_s0 + $0x18] sm:$0x3f] }
 0x10b   :  { %vm1997_vm2 = vcmp.eq.f32.partialorder %v933_v26, 8.507059e+37  ;;  %vm2044_vm7 = vmor %vm959_vm11, %vm960_vm15 }
 0x10c   :  { %2420 = vst [vmem:[#allocation7_spill] sm:$0xff] %v1980_v60  ;;  %v957_v55 = vmul.f32 %v1888_v32, %v956_v63 }
 0x10d   :  { %v1891_v3 = vpop.eup %1305 }
 0x10e   :  { %v1833_v15 = vpop.permute.xlu2 %866  ;;  %v1910_v30 = vpop.eup %1307  ;;  %v925_v52 = vmul.f32 %v1891_v3, %v1831_v48  ;;  %vm930_vm6 = vweird.f32 %v1891_v3 }
 0x10f   :  { %2414 = vst [vmem:[#allocation5_spill] sm:$0xff] %v1910_v30  ;;  %1309 = vrcp.f32 %v1833_v15  ;;  %v1000_v59 = vmul.f32 %v1910_v30, %v1863_v22  ;;  %vm1005_vm8 = vweird.f32 %v1910_v30  ;;  %vm2053_vm9 = vmor %vm929_vm13, %vm930_vm6 }
 0x110   :  { %v926_v51 = vsub.f32 1.0, %v925_v52  ;;  %v2007_v52 = vor.u32 1.1754944e-38, %v1010_v7  ;;  %v1326_v7 = vld [vmem:[%s2389_s0 + $0x10] sm:$0x3f]  ;;  %vm2080_vm11 = vmor %vm1004_vm5, %vm1005_vm8 }
 0x111   :  { %v1001_v24 = vsub.f32 1.0, %v1000_v59 }
 0x112   :  { %v927_v21 = vmul.f32 %v1891_v3, %v926_v51  ;;  %2427 = vst [vmem:[#allocation8_spill] sm:$0xff] %v2007_v52  ;;  %v1325_v51 = vld [vmem:[%s2389_s0 + $0x8] sm:$0x3f] }
 0x113   :  { %v1002_v26 = vmul.f32 %v1910_v30, %v1001_v24 }
 0x115   :  { %v1972_v18 = vpop.eup %1309  ;;  %v2066_v39 = vadd.f32 %v1910_v30, %v1002_v26 }
 0x116   :  { %v1840_v10 = vpop.permute.xlu2 %871  ;;  %v1015_v41 = vmul.f32 %v1972_v18, %v1833_v15 }
 0x117   :  { %v1865_v6 = vpop.permute.xlu1 %856  ;;  %1311 = vrcp.f32 %v1840_v10  ;;  %v1040_v2 = vand.u32 2147483648, %v1840_v10  ;;  %2432 = vst [vmem:[#allocation9_spill] sm:$0xff] %v2066_v39 }
 0x118   :  { %1313 = vrcp.f32 %v1865_v6  ;;  %vm989_vm12 = vweird.f32 %v1865_v6 }
 0x11d   :  { %v1982_v58 = vpop.eup %1311 }
 0x11e   :  { %v2013_v46 = vpop.eup %1313  ;;  %v1030_v63 = vmul.f32 %v1982_v58, %v1840_v10 }
 0x11f   :  { %vm990_vm13 = vweird.f32 %v2013_v46 }
 0x120   :  { %v1031_v49 = vsub.f32 1.0, %v1030_v63  ;;  %v995_v63 = vand.u32 2147483648, %v1865_v6 }
 0x122   :  { %v1032_v60 = vmul.f32 %v1982_v58, %v1031_v49 }
 0x125   :  { %v1919_v13 = vpop.permute.xlu0 %851 }
 0x126   :  { %1315 = vrcp.f32 %v1919_v13  ;;  %vm974_vm15 = vweird.f32 %v1919_v13 }
 0x12b   :  { %v1852_v14 = vpop.permute.xlu2 %653 }
 0x12c   :  { %v711_v34 = vmul.f32 %v1323_v0, %v1852_v14  ;;  %v2092_v5 = vpop.eup %1315 }
 0x12d   :  { %v2019_v59 = vpop.permute.xlu0 %876 }
 0x12e   :  { %v723_v11 = vsel %vm61_vm0, %v711_v34, 0.0  ;;  %v928_v34 = vadd.f32 %v1891_v3, %v927_v21  ;;  %v985_v21 = vmul.f32 %v2013_v46, %v1865_v6  ;;  %1317 = vrcp.f32 %v2019_v59 }
 0x133   :  { %v1875_v27 = vpop.permute.xlu2 %668 }
 0x134   :  { %v714_v54 = vmul.f32 %v1324_v38, %v1875_v27  ;;  %v1016_v27 = vsub.f32 1.0, %v1015_v41  ;;  %v1025_v38 = vand.u32 2147483648, %v1833_v15 }
 0x136   :  { %v1017_v41 = vmul.f32 %v1972_v18, %v1016_v27  ;;  %v2089_v19 = vor.u32 1.1754944e-38, %v1025_v38  ;;  %v2102_v27 = vpop.eup %1317  ;;  %v2104_v38 = vor.u32 1.1754944e-38, %v995_v63 }
 0x138   :  { %2436 = vst [vmem:[#allocation11_spill] sm:$0xff] %v2089_v19  ;;  %v1331_v19 = vld [vmem:[%s2389_s0 + $0x58] sm:$0x3f] }
 0x139   :  { %2438 = vst [vmem:[#allocation13_spill] sm:$0xff] %v2104_v38 }
 0x13b   :  { %v1944_v56 = vpop.permute.xlu2 %698 }
 0x149   :  { %v1905_v44 = vpop.permute.xlu1 %658 }
 0x14a   :  { %v712_v23 = vmul.f32 %v1325_v51, %v1905_v44  ;;  %v2038_v44 = vadd.f32 %v1888_v32, %v957_v55  ;;  %v724_v55 = vrot.slane %v723_v11, 4 }
 0x14c   :  { %v730_v48 = vsel %vm61_vm0, %v712_v23, 0.0  ;;  %v2433_v23 = vmov 0  ;;  %v725_v47 = vadd.f32 %v724_v55, %v723_v11  ;;  %v2465_v62 = vsel %vm2044_vm7, %v1888_v32, %v2038_v44 }
 0x14d   :  { %v2434_v23 = vsel %vm2080_vm11, 4294967295, %v2433_v23  ;;  %v731_v24 = vrot.slane %v730_v48, 4  ;;  %vm2400_vm7 = vcmask 1042434  }
 0x14e   :  { %2435 = vst [vmem:[#allocation10_spill] sm:$0xff] %v2434_v23  ;;  %v726_v63 = vrot.slane %v725_v47, 2 }
 0x14f   :  { %v732_v20 = vadd.f32 %v731_v24, %v730_v48  ;;  %v970_v48 = vmul.f32 %v2092_v5, %v1919_v13 }
 0x151   :  { %v664_v25 = vpop.permute.xlu1 %663  ;;  %v694_v52 = vpop.permute.xlu0 %693 }
 0x152   :  { %v713_v0 = vmul.f32 %v1326_v7, %v664_v25  ;;  %v744_v25 = vsel %vm61_vm0, %v714_v54, 0.0  ;;  %v684_v7 = vpop.permute.xlu2 %683  ;;  %v932_v54 = vsel %vm2053_vm9, %v1891_v3, %v928_v34  ;;  %v1327_v3 = vld [vmem:[%s2389_s0 + $0x30] sm:$0x3f]  ;;  %vm2210_vm9 = vmor %vm989_vm12, %vm990_vm13  ;;  %vm1020_vm13 = vweird.f32 %v1972_v18 }
 0x153   :  { %v745_v26 = vrot.slane %v744_v25, 4  ;;  %v717_v34 = vmul.f32 %v1327_v3, %v684_v7  ;;  %v2439_v7 = vsel %vm1933_vm10, %v1855_v50, %v1926_v53  ;;  %v2119_v49 = vsel %vm1997_vm2, %v1985_v29, %v932_v54  ;;  %v1329_v29 = vld [vmem:[%s2389_s0 + $0x20] sm:$0x3f] }
 0x154   :  { %v737_v45 = vsel %vm61_vm0, %v713_v0, 0.0  ;;  %v986_v0 = vsub.f32 1.0, %v985_v21  ;;  %v2095_v21 = vor.u32 1.1754944e-38, %v1040_v2  ;;  %v2114_v2 = vsel %vm2001_vm3, %v1903_v42, %v2439_v7  ;;  %v1328_v42 = vld [vmem:[%s2389_s0 + $0x40] sm:$0x3f] }
 0x155   :  { %v738_v8 = vrot.slane %v737_v45, 4  ;;  %v746_v3 = vadd.f32 %v745_v26, %v744_v25  ;;  %v765_v4 = vsel %vm61_vm0, %v717_v34, 0.0  ;;  %v2124_v50 = vadd.f32 %v1972_v18, %v1017_v41  ;;  %v1059_v41 = vld [vmem:[%s2392_s3] sm:$0xff]  ;;  %v1330_v34 = vld [vmem:[%s2389_s0 + $0x48] sm:$0x3f] }
 0x156   :  { %2437 = vst [vmem:[#allocation12_spill] sm:$0xff] %v2095_v21  ;;  %v987_v11 = vmul.f32 %v2013_v46, %v986_v0  ;;  %v719_v37 = vmul.f32 %v1328_v42, %v694_v52  ;;  %v2133_v25 = vadd.f32 %v1982_v58, %v1032_v60  ;;  %v980_v54 = vand.u32 2147483648, %v1919_v13  ;;  %v1060_v52 = vld [vmem:[%s2392_s3 + $0x8] sm:$0xff] }
 0x157   :  { %2440 = vst [vmem:[#allocation14_spill] sm:$0xff] %v2124_v50  ;;  %v739_v53 = vadd.f32 %v738_v8, %v737_v45  ;;  %v1045_v45 = vmul.f32 %v2102_v27, %v2019_v59  ;;  %v2442_v60 = vand.u32 2147483647, %v1829_v1  ;;  %v747_v0 = vrot.slane %v746_v3, 2  ;;  %1113 = vmatpush.msra.mxu0 %v1060_v52  ;;  %1236 = vmatpush.msra.mxu1 %v1060_v52 }
 0x158   :  { %2441 = vst [vmem:[#allocation15_spill] sm:$0xff] %v2133_v25  ;;  %v720_v24 = vmul.f32 %v1330_v34, %v1944_v56  ;;  %v2160_v1 = vadd.f32 %v2013_v46, %v987_v11  ;;  %v727_v42 = vadd.f32 %v726_v63, %v725_v47  ;;  %v978_v21 = vand.u32 2147483647, %v1919_v13 }
 0x159   :  { %vm2148_vm10 = vcmp.eq.f32.partialorder %v2442_v60, 8.507059e+37  ;;  %v740_v34 = vrot.slane %v739_v53, 2  ;;  %1114 = vmatpush.msra.mxu0 %v1059_v41  ;;  %1237 = vmatpush.msra.mxu1 %v1059_v41  ;;  %v971_v52 = vsub.f32 1.0, %v970_v48  ;;  %v2168_v11 = vor.u32 1.1754944e-38, %v980_v54 }
 0x15a   :  { %v709_v8 = vpop.permute.xlu2 %708  ;;  %v1046_v47 = vsub.f32 1.0, %v1045_v45  ;;  %v2445_v25 = vand.u32 2147483647, %v1837_v31  ;;  %vm975_vm3 = vweird.f32 %v2092_v5  ;;  %v748_v30 = vadd.f32 %v747_v0, %v746_v3 }
 0x15b   :  { %v722_v56 = vmul.f32 %v1331_v19, %v709_v8  ;;  %v786_v19 = vsel %vm61_vm0, %v720_v24, 0.0  ;;  %v2448_v41 = vand.u32 2147483647, %v1846_v28  ;;  %v728_v54 = vrot.slane %v727_v42, 1 }
 0x15c   :  { %vm2172_vm2 = vcmp.eq.f32.partialorder %v2445_v25, 8.507059e+37  ;;  %v1332_v25 = vld [vmem:[%s2389_s0 + $0x38] sm:$0x3f]  ;;  %v972_v28 = vmul.f32 %v2092_v5, %v971_v52  ;;  %vm2199_vm8 = vcmp.eq.f32.partialorder %v978_v21, 8.507059e+37  ;;  %v992_v13 = vsel %vm2210_vm9, %v2013_v46, %v2160_v1 }
 0x15d   :  { %vm2180_vm5 = vcmp.eq.f32.partialorder %v2448_v41, 8.507059e+37  ;;  %v800_v0 = vsel %vm61_vm0, %v722_v56, 0.0  ;;  %v729_v56 = vadd.f32 %v728_v54, %v727_v42  ;;  %vm1050_vm9 = vweird.f32 %v2102_v27 }
 0x15e   :  { %v973_v42 = vadd.f32 %v2092_v5, %v972_v28  ;;  %v2459_v28 = vand.u32 2147483647, %v1865_v6 }
 0x160   :  { %vm2229_vm12 = vcmp.eq.f32.partialorder %v2459_v28, 8.507059e+37 }
 0x165   :  { %v674_v55 = vpop.permute.xlu1 %673 }
 0x166   :  { %v715_v40 = vmul.f32 %v1329_v29, %v674_v55  ;;  %v766_v55 = vrot.slane %v765_v4, 4  ;;  %v733_v29 = vrot.slane %v732_v20, 2 }
 0x168   :  { %v751_v7 = vsel %vm61_vm0, %v715_v40, 0.0  ;;  %v779_v40 = vsel %vm61_vm0, %v719_v37, 0.0  ;;  %v767_v8 = vadd.f32 %v766_v55, %v765_v4  ;;  %v734_v45 = vadd.f32 %v733_v29, %v732_v20 }
 0x169   :  { %v752_v60 = vrot.slane %v751_v7, 4  ;;  %v780_v31 = vrot.slane %v779_v40, 4  ;;  %v741_v4 = vadd.f32 %v740_v34, %v739_v53  ;;  %v1047_v55 = vmul.f32 %v2102_v27, %v1046_v47 }
 0x16a   :  { %v749_v29 = vrot.slane %v748_v30, 1  ;;  %v768_v23 = vrot.slane %v767_v8, 2  ;;  %v801_v34 = vrot.slane %v800_v0, 4  ;;  %v735_v52 = vrot.slane %v734_v45, 1 }
 0x16b   :  { %v753_v63 = vadd.f32 %v752_v60, %v751_v7  ;;  %v689_v37 = vpop.permute.xlu0 %688  ;;  %v787_v60 = vrot.slane %v786_v19, 4  ;;  %v781_v47 = vadd.f32 %v780_v31, %v779_v40  ;;  %v742_v3 = vrot.slane %v741_v4, 1 }
 0x16c   :  { %v718_v7 = vmul.f32 %v1332_v25, %v689_v37  ;;  %v2451_v37 = vand.u32 2147483647, %v1844_v35  ;;  %v1333_v35 = vld [vmem:[%s2389_s0 + $0x28] sm:$0x3f]  ;;  %v2216_v40 = vadd.f32 %v2102_v27, %v1047_v55  ;;  %v750_v31 = vadd.f32 %v749_v29, %v748_v30 }
 0x16d   :  { %v754_v24 = vrot.slane %v753_v63, 2  ;;  %v736_v17 = vadd.f32 %v735_v52, %v734_v45  ;;  %v802_v6 = vadd.f32 %v801_v34, %v800_v0 }
 0x16e   :  { %v772_v41 = vsel %vm61_vm0, %v718_v7, 0.0  ;;  %vm2195_vm6 = vcmp.eq.f32.partialorder %v2451_v37, 8.507059e+37  ;;  %v679_v7 = vpop.permute.xlu1 %678  ;;  %v938_v46 = vmul.f32 %v2119_v49, %v750_v31  ;;  %v2466_v49 = vand.u32 2147483647, %v1863_v22 }
 0x16f   :  { %v773_v50 = vrot.slane %v772_v41, 4  ;;  %v755_v20 = vadd.f32 %v754_v24, %v753_v63  ;;  %v716_v37 = vmul.f32 %v1333_v35, %v679_v7  ;;  %v788_v63 = vadd.f32 %v787_v60, %v786_v19 }
 0x170   :  { %v769_v24 = vadd.f32 %v768_v23, %v767_v8  ;;  %v743_v23 = vadd.f32 %v742_v3, %v741_v4  ;;  %v2464_v19 = vsel %vm1951_vm1, %v1857_v61, %v1938_v57  ;;  %v967_v61 = vsel %vm2180_vm5, %v1966_v16, %v2465_v62  ;;  %v1334_v16 = vld [vmem:[%s2389_s0 + $0x50] sm:$0x3f] }
 0x171   :  { %v774_v38 = vadd.f32 %v773_v50, %v772_v41  ;;  %v2458_v50 = vsel %vm1882_vm4, %v1842_v12, %v1878_v43  ;;  %v758_v7 = vsel %vm61_vm0, %v716_v37, 0.0  ;;  %vm2237_vm4 = vmor %vm974_vm15, %vm975_vm3  ;;  %v893_v43 = vmul.f32 %v2114_v2, %v729_v56  ;;  %v2478_v12 = vld [vmem:[#allocation13_spill] sm:$0xff] }
 0x172   :  { %v922_v54 = vsel %vm2148_vm10, %v1894_v33, %v2458_v50  ;;  %v782_v33 = vrot.slane %v781_v47, 2  ;;  %v759_v30 = vrot.slane %v758_v7, 4  ;;  %v756_v26 = vrot.slane %v755_v20, 1 }
 0x173   :  { %v775_v41 = vrot.slane %v774_v38, 2  ;;  %vm1034_vm15 = vweird.f32 %v1840_v10  ;;  %vm1035_vm3 = vweird.f32 %v1982_v58  ;;  %v789_v2 = vrot.slane %v788_v63, 2 }
 0x174   :  { %v907_v8 = vsel %vm2172_vm2, %v1915_v36, %v2464_v19  ;;  %v760_v3 = vadd.f32 %v759_v30, %v758_v7  ;;  %v770_v1 = vrot.slane %v769_v24, 1  ;;  %v977_v39 = vsel %vm2237_vm4, %v2092_v5, %v973_v42  ;;  %vm2323_vm10 = vmor %vm1034_vm15, %vm1035_vm3 }
 0x175   :  { %v776_v45 = vadd.f32 %v775_v41, %v774_v38  ;;  %vm2399_vm1 = vcmask 1041409   ;;  %v908_v36 = vmul.f32 %v907_v8, %v736_v17  ;;  %v783_v57 = vadd.f32 %v782_v33, %v781_v47  ;;  %v2474_v47 = vld [vmem:[#allocation6_spill] sm:$0xff] }
 0x176   :  { %v761_v38 = vrot.slane %v760_v3, 2  ;;  %v704_v0 = vpop.permute.xlu1 %703  ;;  %vm2274_vm2 = vcmp.eq.f32.partialorder %v2466_v49, 8.507059e+37  ;;  %v803_v32 = vrot.slane %v802_v6, 2  ;;  %v923_v44 = vmul.f32 %v922_v54, %v743_v23 }
 0x177   :  { %v757_v4 = vadd.f32 %v756_v26, %v755_v20  ;;  %v721_v48 = vmul.f32 %v1334_v16, %v704_v0  ;;  %v790_v5 = vadd.f32 %v789_v2, %v788_v63  ;;  %v777_v60 = vrot.slane %v776_v45, 1  ;;  %v2472_v20 = vld [vmem:[#allocation7_spill] sm:$0xff] }
 0x178   :  { %v762_v29 = vadd.f32 %v761_v38, %v760_v3  ;;  %v2469_v56 = vand.u32 2147483647, %v1833_v15  ;;  %v771_v34 = vadd.f32 %v770_v1, %v769_v24  ;;  %v2473_v52 = vsel %vm1991_vm14, %v1870_v9, %v2472_v20  ;;  %v2493_v38 = vld [vmem:[#allocation8_spill] sm:$0xff] }
 0x179   :  { %v952_v35 = vsel %vm2195_vm6, %v2474_v47, %v2473_v52  ;;  %v793_v37 = vsel %vm61_vm0, %v721_v48, 0.0  ;;  %v982_v21 = vsel %vm2199_vm8, %v2168_v11, %v977_v39  ;;  %v2475_v42 = vand.u32 2147483647, %v1840_v10  ;;  %v2487_v10 = vld [vmem:[#allocation14_spill] sm:$0xff]  ;;  %v2490_v39 = vld [vmem:[#allocation5_spill] sm:$0xff] }
 0x17a   :  { %vm2283_vm5 = vcmp.eq.f32.partialorder %v2469_v56, 8.507059e+37  ;;  %v1078_v14 = vsel %vm2399_vm1, %v908_v36, %v893_v43  ;;  %v784_v50 = vrot.slane %v783_v57, 1  ;;  %v763_v9 = vrot.slane %v762_v29, 1  ;;  %v2491_v36 = vld [vmem:[#allocation9_spill] sm:$0xff] }
 0x17b   :  { %vm2301_vm4 = vcmp.eq.f32.partialorder %v2475_v42, 8.507059e+37  ;;  %v794_v54 = vrot.slane %v793_v37, 4  ;;  %v804_v31 = vadd.f32 %v803_v32, %v802_v6  ;;  %v953_v25 = vmul.f32 %v952_v35, %v757_v4 }
 0x17c   :  { %v1080_v24 = vsel %vm2400_vm7, %v923_v44, %v1078_v14  ;;  %vm2401_vm0 = vcmask 1043459   ;;  %v778_v41 = vadd.f32 %v777_v60, %v776_v45  ;;  %v764_v7 = vadd.f32 %v763_v9, %v762_v29  ;;  %v2494_v44 = vld [vmem:[#allocation15_spill] sm:$0xff] }
 0x17d   :  { %v795_v53 = vadd.f32 %v794_v54, %v793_v37  ;;  %vm1083_vm14 = vcmask 1044484   ;;  %v791_v11 = vrot.slane %v790_v5, 1  ;;  %v983_v28 = vmul.f32 %v982_v21, %v771_v34  ;;  %v2497_v34 = vld [vmem:[#allocation12_spill] sm:$0xff] }
 0x17e   :  { %v997_v17 = vsel %vm2229_vm12, %v2478_v12, %v992_v13  ;;  %vm1085_vm6 = vcmask 1045509   ;;  %vm2479_vm8 = vweird.f32 %v1833_v15  ;;  %v968_v33 = vmul.f32 %v967_v61, %v764_v7 }
 0x17f   :  { %vm2314_vm1 = vmor %vm2479_vm8, %vm1020_vm13  ;;  %v796_v30 = vrot.slane %v795_v53, 2  ;;  %v1082_v6 = vsel %vm2401_vm0, %v938_v46, %v1080_v24  ;;  %vm1087_vm7 = vcmask 1046534   ;;  %v805_v23 = vrot.slane %v804_v31, 1 }
 0x180   :  { %v785_v26 = vadd.f32 %v784_v50, %v783_v57  ;;  %v1084_v15 = vsel %vm1083_vm14, %v953_v25, %v1082_v6  ;;  %vm1089_vm12 = vcmask 1047559   ;;  %vm2484_vm13 = vweird.f32 %v2019_v59 }
 0x181   :  { %vm2331_vm8 = vmor %vm2484_vm13, %vm1050_vm9  ;;  %v797_v2 = vadd.f32 %v796_v30, %v795_v53  ;;  %v998_v19 = vmul.f32 %v997_v17, %v778_v41  ;;  %v1086_v8 = vsel %vm1085_vm6, %v968_v33, %v1084_v15  ;;  %vm1094_vm0 = vcmask 130048  }
 0x182   :  { %v1022_v45 = vsel %vm2314_vm1, %v1972_v18, %v2487_v10  ;;  %v2488_v3 = vand.u32 2147483648, %v2019_v59  ;;  %v792_v1 = vadd.f32 %v791_v11, %v790_v5  ;;  %v1088_v62 = vsel %vm1087_vm7, %v983_v28, %v1086_v8  ;;  %v2496_v5 = vld [vmem:[#allocation11_spill] sm:$0xff] }
 0x183   :  { %v2492_v57 = vsel %vm2080_vm11, %v2490_v39, %v2491_v36  ;;  %v798_v49 = vrot.slane %v797_v2, 1  ;;  %v1090_v32 = vsel %vm1089_vm12, %v998_v19, %v1088_v62  ;;  %v1037_v18 = vsel %vm2323_vm10, %v1982_v58, %v2494_v44 }
 0x184   :  { %v1056_v46 = vor.u32 1.1754944e-38, %v2488_v3  ;;  %v1012_v0 = vsel %vm2274_vm2, %v2493_v38, %v2492_v57  ;;  %v2495_v4 = vand.u32 2147483647, %v2019_v59  ;;  %v806_v16 = vadd.f32 %v805_v23, %v804_v31  ;;  %1232 = vmatmul.msk.f32.vlgmr.msra.gmra.mxu0 %vm1094_vm0, %v1090_v32 }
 0x185   :  { %v1013_v48 = vmul.f32 %v1012_v0, %v785_v26  ;;  %v1052_v51 = vsel %vm2331_vm8, %v2102_v27, %v2216_v40  ;;  %v1027_v60 = vsel %vm2283_vm5, %v2496_v5, %v1022_v45  ;;  %v799_v29 = vadd.f32 %v798_v49, %v797_v2  ;;  %v1246_v27 = vld [vmem:[%s2393_s4] ss:$0 sm:$0xff]  ;;  %s1362_s4 = smov [#allocation2]  }
 0x186   :  { %vm1054_vm15 = vcmp.eq.f32.partialorder %v2495_v4, 8.507059e+37  ;;  %v1028_v56 = vmul.f32 %v1027_v60, %v792_v1  ;;  %v1042_v58 = vsel %vm2301_vm4, %v2497_v34, %v1037_v18  ;;  %vm2498_vm11 = vcmask 1041409   ;;  %s1218_s16 = sshll.u32 %s1362_s4, 4  ;;  %s1219_s16 = int_to_ptr.vmem [resolvable:$true] %s1218_s16 }
 0x187   :  { %v1043_v59 = vmul.f32 %v1042_v58, %v799_v29  ;;  %v1057_v20 = vsel %vm1054_vm15, %v1056_v46, %v1052_v51  ;;  %vm2499_vm10 = vcmask 1042434   ;;  %vm2500_vm3 = vcmask 1043459  }
 0x188   :  { %v1058_v52 = vmul.f32 %v1057_v20, %v806_v16  ;;  %v1091_v47 = vsel %vm2498_vm11, %v1028_v56, %v1013_v48  ;;  %vm1210_vm14 = vcmask 261120   ;;  %vm1212_vm12 = vcmask 257024  }
 0x189   :  { %v1092_v35 = vsel %vm2499_vm10, %v1043_v59, %v1091_v47 }
 0x18a   :  { %v1093_v37 = vsel %vm2500_vm3, %v1058_v52, %v1092_v35 }
 0x18b   :  { %1233 = vmatmul.msk.f32.vlgmr.msra.gmra.mxu1 %vm1094_vm0, %v1093_v37 }
 0x201   :  { %v1116_v40 = vpop.f32.mrf.mxu0 }
 0x202   :  { %v2373_v22 = vadd.f32 %v1246_v27, %v1116_v40 }
 0x204   :  { %v1124_v21 = vmul.f32 0.70710677, %v2373_v22 }
 0x206   :  { %v1126_v42 = vmul.f32 %v1124_v21, %v1124_v21 }
 0x208   :  { %v1127_v63 = vmin.f32 %v1126_v42, 16.0  ;;  %v1119_v14 = vpop.f32.mrf.mxu1 }
 0x209   :  { %v2376_v50 = vadd.f32 %v1246_v27, %v1119_v14 }
 0x20a   :  { %v1128_v9 = vmul.f32 2.1237322e-06, %v1127_v63  ;;  %v1139_v54 = vmul.f32 3.8918573e-05, %v1127_v63 }
 0x20b   :  { %v2379_v31 = vmul.f32 0.70710677, %v2376_v50 }
 0x20c   :  { %v1129_v25 = vadd.f32 0.00028619796, %v1128_v9  ;;  %v1140_v24 = vadd.f32 0.001143296, %v1139_v54 }
 0x20d   :  { %v1166_v41 = vmul.f32 %v2379_v31, %v2379_v31 }
 0x20e   :  { %v1130_v7 = vmul.f32 %v1129_v25, %v1127_v63  ;;  %v1141_v53 = vmul.f32 %v1140_v24, %v1127_v63  ;;  %v1122_v25 = vmul.f32 0.5, %v2373_v22  ;;  %v1123_v22 = vmul.f32 0.5, %v2376_v50 }
 0x20f   :  { %v1167_v11 = vmin.f32 %v1166_v41, 16.0 }
 0x210   :  { %v1142_v28 = vadd.f32 0.014752088, %v1141_v53  ;;  %v1131_v12 = vadd.f32 0.0036580483, %v1130_v7 }
 0x211   :  { %v1168_v17 = vmul.f32 2.1237322e-06, %v1167_v11  ;;  %v1179_v43 = vmul.f32 3.8918573e-05, %v1167_v11 }
 0x212   :  { %v1143_v33 = vmul.f32 %v1142_v28, %v1127_v63  ;;  %v1132_v23 = vmul.f32 %v1131_v12, %v1127_v63 }
 0x213   :  { %v1169_v30 = vadd.f32 0.00028619796, %v1168_v17  ;;  %v1180_v6 = vadd.f32 0.001143296, %v1179_v43 }
 0x214   :  { %v1144_v55 = vadd.f32 0.112945676, %v1143_v33  ;;  %v1133_v10 = vadd.f32 0.05243302, %v1132_v23 }
 0x215   :  { %v1170_v26 = vmul.f32 %v1169_v30, %v1167_v11  ;;  %v1181_v15 = vmul.f32 %v1180_v6, %v1167_v11 }
 0x216   :  { %v1145_v13 = vmul.f32 %v1144_v55, %v1127_v63  ;;  %v1134_v61 = vmul.f32 %v1133_v10, %v1127_v63 }
 0x217   :  { %v1182_v2 = vadd.f32 0.014752088, %v1181_v15  ;;  %v1171_v8 = vadd.f32 0.0036580483, %v1170_v26 }
 0x218   :  { %v1146_v19 = vadd.f32 0.4994258, %v1145_v13  ;;  %v1135_v38 = vadd.f32 0.18741608, %v1134_v61 }
 0x219   :  { %v1183_v45 = vmul.f32 %v1182_v2, %v1167_v11  ;;  %v1172_v62 = vmul.f32 %v1171_v8, %v1167_v11 }
 0x21a   :  { %v1147_v3 = vmul.f32 %v1146_v19, %v1127_v63  ;;  %v1136_v18 = vmul.f32 %v1135_v38, %v1127_v63 }
 0x21b   :  { %v1184_v46 = vadd.f32 0.112945676, %v1183_v45  ;;  %v1173_v57 = vadd.f32 0.05243302, %v1172_v62 }
 0x21c   :  { %v1148_v1 = vadd.f32 1.0, %v1147_v3  ;;  %v1137_v5 = vadd.f32 1.1283791, %v1136_v18 }
 0x21d   :  { %v1185_v39 = vmul.f32 %v1184_v46, %v1167_v11  ;;  %v1174_v44 = vmul.f32 %v1173_v57, %v1167_v11 }
 0x21e   :  { %1319 = vrcp.f32 %v1148_v1  ;;  %v1160_v48 = vand.u32 2147483648, %v1148_v1  ;;  %v1158_v29 = vand.u32 2147483647, %v1148_v1  ;;  %vm1154_vm1 = vweird.f32 %v1148_v1 }
 0x21f   :  { %v1186_v36 = vadd.f32 0.4994258, %v1185_v39  ;;  %v1175_v51 = vadd.f32 0.18741608, %v1174_v44  ;;  %v1138_v52 = vmul.f32 %v1137_v5, %v1124_v21 }
 0x220   :  { %v1161_v58 = vor.u32 1.1754944e-38, %v1160_v48  ;;  %vm1159_vm7 = vcmp.eq.f32.partialorder %v1158_v29, 8.507059e+37 }
 0x221   :  { %v1187_v0 = vmul.f32 %v1186_v36, %v1167_v11  ;;  %v1176_v59 = vmul.f32 %v1175_v51, %v1167_v11 }
 0x223   :  { %v1188_v49 = vadd.f32 1.0, %v1187_v0  ;;  %v1177_v42 = vadd.f32 1.1283791, %v1176_v59 }
 0x224   :  { %v1320_v32 = vpop.eup %1319 }
 0x225   :  { %v1150_v4 = vmul.f32 %v1320_v32, %v1148_v1  ;;  %1321 = vrcp.f32 %v1188_v49  ;;  %vm1155_vm9 = vweird.f32 %v1320_v32  ;;  %v1200_v40 = vand.u32 2147483648, %v1188_v49 }
 0x226   :  { %vm1156_vm2 = vmor %vm1154_vm1, %vm1155_vm9  ;;  %v1198_v14 = vand.u32 2147483647, %v1188_v49  ;;  %vm1194_vm4 = vweird.f32 %v1188_v49  ;;  %v1178_v21 = vmul.f32 %v1177_v42, %v2379_v31 }
 0x227   :  { %v1151_v16 = vsub.f32 1.0, %v1150_v4  ;;  %v1201_v41 = vor.u32 1.1754944e-38, %v1200_v40 }
 0x228   :  { %vm1199_vm6 = vcmp.eq.f32.partialorder %v1198_v14, 8.507059e+37 }
 0x229   :  { %v1152_v60 = vmul.f32 %v1320_v32, %v1151_v16 }
 0x22b   :  { %v1322_v56 = vpop.eup %1321  ;;  %v1153_v34 = vadd.f32 %v1320_v32, %v1152_v60 }
 0x22c   :  { %v1190_v20 = vmul.f32 %v1322_v56, %v1188_v49  ;;  %vm1195_vm5 = vweird.f32 %v1322_v56 }
 0x22d   :  { %v1157_v47 = vsel %vm1156_vm2, %v1320_v32, %v1153_v34  ;;  %vm1196_vm0 = vmor %vm1194_vm4, %vm1195_vm5 }
 0x22e   :  { %v1162_v35 = vsel %vm1159_vm7, %v1161_v58, %v1157_v47  ;;  %v1191_v37 = vsub.f32 1.0, %v1190_v20 }
 0x22f   :  { %v1163_v27 = vmul.f32 %v1162_v35, %v1138_v52 }
 0x230   :  { %v1192_v63 = vmul.f32 %v1322_v56, %v1191_v37 }
 0x231   :  { %v1234_v9 = vclamps-f32 %v1163_v27, 1.0 }
 0x232   :  { %v1193_v54 = vadd.f32 %v1322_v56, %v1192_v63 }
 0x233   :  { %v1206_v24 = vadd.f32 1.0, %v1234_v9 }
 0x234   :  { %v1197_v7 = vsel %vm1196_vm0, %v1322_v56, %v1193_v54 }
 0x235   :  { %v1208_v53 = vmul.f32 %v1206_v24, %v1122_v25  ;;  %v1202_v11 = vsel %vm1199_vm6, %v1201_v41, %v1197_v7 }
 0x236   :  { %v1203_v28 = vmul.f32 %v1202_v11, %v1178_v21 }
 0x237   :  { %1211 = vst.msk [vmem:[#allocation2] sm:$0xff] %vm1210_vm14, %v1208_v53 }
 0x238   :  { %v1235_v12 = vclamps-f32 %v1203_v28, 1.0 }
 0x23a   :  { %v1207_v17 = vadd.f32 1.0, %v1235_v12 }
 0x23c   :  { %v1209_v31 = vmul.f32 %v1207_v17, %v1123_v22 }
 0x23e   :  { %1213 = vst.msk [vmem:[#allocation2 + $0x8] sm:$0xf] %vm1212_vm12, %v1209_v31 }
 0x23f   :  { %1226 = dma.vmem_to_hbm [thread:$0]  %s1219_s16, 256, %s1221_s19, [#allocation3], %s1363_s20, %s1363_s20, %s1364_s21  }
 0x240   :  { %1359 = dma.done.wait [#allocation3], 256  }
 0x241   :  { %1360 = vsyncadd [#allocation3], 4294967040 }
 0x242   :  { %1231 = vsyncpa [#allocation3], 1 }

</bundles_post_ra>
